<compile_context>
chip_gen: v7x
topology: tpu7x:2x2x1
jax: 0.10.0
libtpu: 0.0.40
codegen_flags: <defaults>
</compile_context>

<pallas_src>
import numpy as np

import jax
import jax.numpy as jnp
from jax.experimental import pallas as pl
from jax.experimental.pallas import tpu as pltpu

# ----------------------------------------------------------------------------
# Hyperparameters (small shapes consistent with the module's forward)
# ----------------------------------------------------------------------------
NUM_SENSOR_CHANNELS = 4
WINDOW_LENGTH = 17
N_FILTERS = 32
N_HIDDEN = 32
N_CLASSES = 8
FILTER_SIZE = 5
BATCH = 2

# Time extent after each conv layer (VALID conv, stride 1).
T0 = WINDOW_LENGTH
T1 = T0 - (FILTER_SIZE - 1)     # 13
T2 = T1 - (FILTER_SIZE - 1)     # 9
T3 = T2 - (FILTER_SIZE - 1)     # 5
T4 = T3 - (FILTER_SIZE - 1)     # 1  == until_lstm_remaining_column
assert T4 == 1, "kernel assumes the conv stack reduces time to a single step"

# Flattened activation widths (time-major, channel-minor except the raw input
# which keeps PyTorch's (C, T) channel-major order).
W_IN = NUM_SENSOR_CHANNELS * T0      # 68
W1 = T1 * N_FILTERS                  # 416
W2 = T2 * N_FILTERS                  # 288
W3 = T3 * N_FILTERS                  # 160
W4 = T4 * N_FILTERS                  # 32
assert N_CLASSES <= N_HIDDEN and 3 * N_HIDDEN <= 128 and W_IN <= 128

SLAB_W = max(W1, W2, W3, W4, 4 * N_HIDDEN, N_CLASSES)   # 416


def _align8(n):
    return (n + 7) // 8 * 8


# Row layout of the single packed parameter slab (all column slices start at 0,
# all section row offsets are multiples of 8 -> clean sublane-aligned loads).
ROW_M1 = 0
ROW_M2 = ROW_M1 + _align8(W_IN)          # 72
ROW_M3 = ROW_M2 + _align8(W1)            # 488
ROW_M4 = ROW_M3 + _align8(W2)            # 776
ROW_WIH1 = ROW_M4 + _align8(W3)          # 936
ROW_WHH1 = ROW_WIH1 + _align8(N_FILTERS)  # 968
ROW_WIH2 = ROW_WHH1 + _align8(N_HIDDEN)   # 1000
ROW_WHH2 = ROW_WIH2 + _align8(N_HIDDEN)   # 1032
ROW_WFC = ROW_WHH2 + _align8(N_HIDDEN)    # 1064
ROW_BIAS = ROW_WFC + _align8(N_HIDDEN)    # 1096  (7 bias rows follow)
N_BIAS_ROWS = 7
TOTAL_ROWS = _align8(ROW_BIAS + N_BIAS_ROWS)   # 1104


# ----------------------------------------------------------------------------
# Kernel
# ----------------------------------------------------------------------------
def har_kernel(xin_ref, w_ref, out_ref):
    # xin_ref: (24, 128)  rows [0:B]=flattened x, [8:8+B]=h0, [16:16+B]=c0
    # w_ref:   (TOTAL_ROWS, SLAB_W) packed parameter slab
    # out_ref: (B, 128)   [0:8]=logits, [32:64]=h_n, [64:96]=c_n
    B = out_ref.shape[0]
    H = N_HIDDEN

    act = xin_ref[0:B, 0:W_IN]                 # (B, 68) channel-major input
    h0 = xin_ref[8:8 + B, 0:H]                 # (B, 32)
    c0 = xin_ref[16:16 + B, 0:H]               # (B, 32)

    def conv_layer(a, row, k_rows, n_cols, bias_row):
        # One block-Toeplitz matmul == full Conv1d layer (+bias, relu).
        w = w_ref[row:row + k_rows, 0:n_cols]
        b = w_ref[bias_row:bias_row + 1, 0:n_cols]
        z = jnp.dot(a, w, preferred_element_type=jnp.float32) + b
        return jnp.maximum(z, 0.0)

    act = conv_layer(act, ROW_M1, W_IN, W1, ROW_BIAS + 0)   # (B, 416)
    act = conv_layer(act, ROW_M2, W1, W2, ROW_BIAS + 1)     # (B, 288)
    act = conv_layer(act, ROW_M3, W2, W3, ROW_BIAS + 2)     # (B, 160)
    x_t = conv_layer(act, ROW_M4, W3, W4, ROW_BIAS + 3)     # (B, 32) single LSTM step

    def lstm_step(xin, h, c, row_wih, in_dim, row_whh, bias_row):
        wih = w_ref[row_wih:row_wih + in_dim, 0:4 * H]      # (in_dim, 4H)
        whh = w_ref[row_whh:row_whh + H, 0:4 * H]           # (H, 4H)
        b = w_ref[bias_row:bias_row + 1, 0:4 * H]           # (1, 4H) = bih + bhh
        gates = (jnp.dot(xin, wih, preferred_element_type=jnp.float32)
                 + jnp.dot(h, whh, preferred_element_type=jnp.float32) + b)
        sg = jax.nn.sigmoid(gates)          # full 128-lane EUP op
        tg = jnp.tanh(gates)                # full 128-lane EUP op
        i = sg[:, 0:H]                      # PyTorch gate order [i, f, g, o]
        f = sg[:, H:2 * H]
        g = tg[:, 2 * H:3 * H]
        o = sg[:, 3 * H:4 * H]
        c_new = f * c + i * g
        h_new = o * jnp.tanh(c_new)
        return h_new, c_new

    h1, c1 = lstm_step(x_t, h0, c0, ROW_WIH1, N_FILTERS, ROW_WHH1, ROW_BIAS + 4)
    # Matches the PyTorch reference exactly: lstm2 consumes lstm1's output
    # sequence (== h1 for the single timestep) and is seeded with lstm1's
    # output (h, c) state.
    h2, c2 = lstm_step(h1, h1, c1, ROW_WIH2, N_HIDDEN, ROW_WHH2, ROW_BIAS + 5)

    # TODO(synk): nn.Dropout is stochastic; implemented here as eval-mode identity.
    wfc = w_ref[ROW_WFC:ROW_WFC + H, 0:N_CLASSES]
    bfc = w_ref[ROW_BIAS + 6:ROW_BIAS + 7, 0:N_CLASSES]
    logits = jnp.dot(h2, wfc, preferred_element_type=jnp.float32) + bfc   # (B, 8)

    # Single lane-dense (B, 128) output: [logits | pad | h_n | c_n | pad]
    pad_a = jnp.zeros((B, N_HIDDEN - N_CLASSES), jnp.float32)
    pad_b = jnp.zeros((B, 128 - 3 * N_HIDDEN), jnp.float32)
    out_ref[...] = jnp.concatenate([logits, pad_a, h2, c2, pad_b], axis=1)


# ----------------------------------------------------------------------------
# One-time host-side parameter packing
# ----------------------------------------------------------------------------
def _conv_toeplitz(w, t_in, channel_major_in):
    """Expand a Conv1d weight (Cout, Cin, K) into a block-Toeplitz matrix M so
    that flat_out = flat_in @ M reproduces the VALID cross-correlation.

    Input layout:  channel-major (ci*T_in + t) if channel_major_in else
                   time-major (t*Cin + ci).
    Output layout: time-major (t_out*Cout + co).
    """
    w = np.asarray(w, np.float32)
    cout, cin, k = w.shape
    t_out = t_in - k + 1
    m = np.zeros((cin * t_in, t_out * cout), np.float32)
    for to in range(t_out):
        for kk in range(k):
            t = to + kk
            blk = w[:, :, kk].T                      # (cin, cout)
            if channel_major_in:
                m[t::t_in, to * cout:(to + 1) * cout] = blk
            else:
                m[t * cin:(t + 1) * cin, to * cout:(to + 1) * cout] = blk
    return m


def pack_params(p):
    """Pack all parameters into a single (TOTAL_ROWS, SLAB_W) f32 slab (1 DMA)."""
    slab = np.zeros((TOTAL_ROWS, SLAB_W), np.float32)

    def put(row, mat):
        mat = np.asarray(mat, np.float32)
        slab[row:row + mat.shape[0], 0:mat.shape[1]] = mat

    put(ROW_M1, _conv_toeplitz(p['conv1_w'], T0, channel_major_in=True))
    put(ROW_M2, _conv_toeplitz(p['conv2_w'], T1, channel_major_in=False))
    put(ROW_M3, _conv_toeplitz(p['conv3_w'], T2, channel_major_in=False))
    put(ROW_M4, _conv_toeplitz(p['conv4_w'], T3, channel_major_in=False))
    put(ROW_WIH1, np.asarray(p['lstm1_wih'], np.float32).T)
    put(ROW_WHH1, np.asarray(p['lstm1_whh'], np.float32).T)
    put(ROW_WIH2, np.asarray(p['lstm2_wih'], np.float32).T)
    put(ROW_WHH2, np.asarray(p['lstm2_whh'], np.float32).T)
    put(ROW_WFC, np.asarray(p['fc_w'], np.float32).T)
    # Biases: conv biases pre-tiled over time; LSTM bih+bhh folded.
    put(ROW_BIAS + 0, np.tile(np.asarray(p['conv1_b'], np.float32), T1)[None, :])
    put(ROW_BIAS + 1, np.tile(np.asarray(p['conv2_b'], np.float32), T2)[None, :])
    put(ROW_BIAS + 2, np.tile(np.asarray(p['conv3_b'], np.float32), T3)[None, :])
    put(ROW_BIAS + 3, np.tile(np.asarray(p['conv4_b'], np.float32), T4)[None, :])
    put(ROW_BIAS + 4, (np.asarray(p['lstm1_bih'], np.float32)
                       + np.asarray(p['lstm1_bhh'], np.float32))[None, :])
    put(ROW_BIAS + 5, (np.asarray(p['lstm2_bih'], np.float32)
                       + np.asarray(p['lstm2_bhh'], np.float32))[None, :])
    put(ROW_BIAS + 6, np.asarray(p['fc_b'], np.float32)[None, :])
    return jnp.asarray(slab)


def init_params(key):
    ks = jax.random.split(key, 18)

    def u(k, shape, fan_in):
        bound = 1.0 / jnp.sqrt(jnp.float32(fan_in))
        return jax.random.uniform(k, shape, jnp.float32, -bound, bound)

    p = {}
    cin = NUM_SENSOR_CHANNELS
    p['conv1_w'] = u(ks[0], (N_FILTERS, cin, FILTER_SIZE), cin * FILTER_SIZE)
    p['conv1_b'] = u(ks[1], (N_FILTERS,), cin * FILTER_SIZE)
    for li, name in enumerate(['conv2', 'conv3', 'conv4']):
        p[f'{name}_w'] = u(ks[2 + 2 * li], (N_FILTERS, N_FILTERS, FILTER_SIZE),
                           N_FILTERS * FILTER_SIZE)
        p[f'{name}_b'] = u(ks[3 + 2 * li], (N_FILTERS,), N_FILTERS * FILTER_SIZE)
    p['lstm1_wih'] = u(ks[8], (4 * N_HIDDEN, N_FILTERS), N_HIDDEN)
    p['lstm1_whh'] = u(ks[9], (4 * N_HIDDEN, N_HIDDEN), N_HIDDEN)
    p['lstm1_bih'] = u(ks[10], (4 * N_HIDDEN,), N_HIDDEN)
    p['lstm1_bhh'] = u(ks[11], (4 * N_HIDDEN,), N_HIDDEN)
    p['lstm2_wih'] = u(ks[12], (4 * N_HIDDEN, N_HIDDEN), N_HIDDEN)
    p['lstm2_whh'] = u(ks[13], (4 * N_HIDDEN, N_HIDDEN), N_HIDDEN)
    p['lstm2_bih'] = u(ks[14], (4 * N_HIDDEN,), N_HIDDEN)
    p['lstm2_bhh'] = u(ks[15], (4 * N_HIDDEN,), N_HIDDEN)
    p['fc_w'] = u(ks[16], (N_CLASSES, N_HIDDEN), N_HIDDEN)
    p['fc_b'] = u(ks[17], (N_CLASSES,), N_HIDDEN)
    return p


# ----------------------------------------------------------------------------
# Steady-state forward (jitted): 2 input DMAs, 1 output DMA, 1 kernel launch.
# ----------------------------------------------------------------------------
def _pad_tile(v):
    r, c = v.shape
    return jnp.pad(v, ((0, 8 - r), (0, 128 - c)))


@jax.jit
def har_forward(x, hidden, wslab):
    h0, c0 = hidden                      # each (n_layers=1, B, n_hidden)
    B = x.shape[0]
    assert B <= 8
    x_flat = jnp.reshape(x.astype(jnp.float32), (B, W_IN))   # channel-major (C,T) flatten
    xin = jnp.concatenate(
        [_pad_tile(x_flat), _pad_tile(h0[0]), _pad_tile(c0[0])], axis=0)   # (24, 128)

    vmem = pl.BlockSpec(memory_space=pltpu.MemorySpace.VMEM)
    packed = pl.pallas_call(
        har_kernel,
        out_shape=jax.ShapeDtypeStruct((B, 128), jnp.float32),
        in_specs=[vmem, vmem],
        out_specs=vmem,
    )(xin, wslab)

    logits = packed[:, 0:N_CLASSES]
    hn = packed[:, N_HIDDEN:2 * N_HIDDEN]
    cn = packed[:, 2 * N_HIDDEN:3 * N_HIDDEN]
    return logits, (hn[None], cn[None])


# ----------------------------------------------------------------------------
# Pure-JAX reference of the PyTorch forward (eval mode), for parity checking.
# ----------------------------------------------------------------------------
def reference_forward(x, hidden, p):
    hp = jax.lax.Precision.HIGHEST

    def conv_relu(inp, w, b):
        K = w.shape[2]
        T_out = inp.shape[2] - K + 1
        acc = jnp.zeros((inp.shape[0], w.shape[0], T_out), jnp.float32)
        for k in range(K):
            acc = acc + jnp.einsum('bct,oc->bot', inp[:, :, k:k + T_out],
                                   w[:, :, k], precision=hp)
        return jax.nn.relu(acc + b[None, :, None])

    y = conv_relu(x, p['conv1_w'], p['conv1_b'])
    y = conv_relu(y, p['conv2_w'], p['conv2_b'])
    y = conv_relu(y, p['conv3_w'], p['conv3_b'])
    y = conv_relu(y, p['conv4_w'], p['conv4_b'])
    x_t = y[:, :, 0]
    h0, c0 = hidden

    def lstm(xin, h, c, wih, whh, bih, bhh):
        gates = (jnp.dot(xin, wih.T, precision=hp) + bih
                 + jnp.dot(h, whh.T, precision=hp) + bhh)
        H = h.shape[1]
        i = jax.nn.sigmoid(gates[:, 0:H])
        f = jax.nn.sigmoid(gates[:, H:2 * H])
        g = jnp.tanh(gates[:, 2 * H:3 * H])
        o = jax.nn.sigmoid(gates[:, 3 * H:4 * H])
        c_new = f * c + i * g
        return o * jnp.tanh(c_new), c_new

    h1, c1 = lstm(x_t, h0[0], c0[0], p['lstm1_wih'], p['lstm1_whh'],
                  p['lstm1_bih'], p['lstm1_bhh'])
    h2, c2 = lstm(h1, h1, c1, p['lstm2_wih'], p['lstm2_whh'],
                  p['lstm2_bih'], p['lstm2_bhh'])
    logits = jnp.dot(h2, p['fc_w'].T, precision=hp) + p['fc_b']
    return logits, (h2[None], c2[None])


if __name__ == "__main__":
    key = jax.random.PRNGKey(0)
    k_param, k_x = jax.random.split(key)
    params = init_params(k_param)
    wslab = pack_params(params)          # one-time packing / transposing

    x = jax.random.normal(k_x, (BATCH, NUM_SENSOR_CHANNELS, WINDOW_LENGTH), jnp.float32)
    hidden = (jnp.zeros((1, BATCH, N_HIDDEN), jnp.float32),
              jnp.zeros((1, BATCH, N_HIDDEN), jnp.float32))

    out, (hn, cn) = har_forward(x, hidden, wslab)
    jax.block_until_ready((out, hn, cn))

    # Parity against the plain-JAX reference of the PyTorch forward (eval mode).
    ref_out, (ref_hn, ref_cn) = reference_forward(x, hidden, params)
    np.testing.assert_allclose(np.asarray(out), np.asarray(ref_out), rtol=5e-2, atol=5e-2)
    np.testing.assert_allclose(np.asarray(hn), np.asarray(ref_hn), rtol=5e-2, atol=5e-2)
    np.testing.assert_allclose(np.asarray(cn), np.asarray(ref_cn), rtol=5e-2, atol=5e-2)

    assert out.shape == (BATCH, N_CLASSES)
    assert hn.shape == (1, BATCH, N_HIDDEN) and cn.shape == (1, BATCH, N_HIDDEN)
    print("KERNEL_OK")
</pallas_src>

<mosaic_0001>
module attributes {stable_mosaic.version = 11 : i64} {
  func.func @har_kernel(%arg0: memref<24x128xf32, #tpu.memory_space<vmem>>, %arg1: memref<1104x416xf32, #tpu.memory_space<vmem>>, %arg2: memref<2x128xf32, #tpu.memory_space<vmem>>) attributes {dimension_semantics = [], scalar_prefetch = 0 : i64, scratch_operands = 0 : i64, tpu.core_type = #tpu.core_type<tc>} {
    %c0 = arith.constant 0 : index
    %c0_0 = arith.constant 0 : index
    %0 = vector.load %arg0[%c0, %c0_0] : memref<24x128xf32, #tpu.memory_space<vmem>>, vector<2x68xf32>
    %c8 = arith.constant 8 : index
    %c0_1 = arith.constant 0 : index
    %1 = vector.load %arg0[%c8, %c0_1] : memref<24x128xf32, #tpu.memory_space<vmem>>, vector<2x32xf32>
    %c16 = arith.constant 16 : index
    %c0_2 = arith.constant 0 : index
    %2 = vector.load %arg0[%c16, %c0_2] : memref<24x128xf32, #tpu.memory_space<vmem>>, vector<2x32xf32>
    %c0_3 = arith.constant 0 : index
    %c0_4 = arith.constant 0 : index
    %3 = vector.load %arg1[%c0_3, %c0_4] : memref<1104x416xf32, #tpu.memory_space<vmem>>, vector<68x416xf32>
    %c1096 = arith.constant 1096 : index
    %c0_5 = arith.constant 0 : index
    %4 = vector.load %arg1[%c1096, %c0_5] : memref<1104x416xf32, #tpu.memory_space<vmem>>, vector<1x416xf32>
    %cst = arith.constant dense<0.000000e+00> : vector<2x416xf32>
    %5 = tpu.matmul %0, %3, %cst {dimension_numbers = #tpu.dot_dimension_numbers<[1], [0], [0], [1], [0, 0, 1, 1], [], []>} : vector<2x68xf32>, vector<68x416xf32>, vector<2x416xf32> -> vector<2x416xf32>
    %6 = vector.broadcast %4 : vector<1x416xf32> to vector<2x416xf32>
    %7 = arith.addf %5, %6 : vector<2x416xf32>
    %cst_6 = arith.constant 0.000000e+00 : f32
    %8 = vector.broadcast %cst_6 : f32 to vector<2x416xf32>
    %9 = arith.maximumf %7, %8 : vector<2x416xf32>
    %c72 = arith.constant 72 : index
    %c0_7 = arith.constant 0 : index
    %10 = vector.load %arg1[%c72, %c0_7] : memref<1104x416xf32, #tpu.memory_space<vmem>>, vector<416x288xf32>
    %c1097 = arith.constant 1097 : index
    %c0_8 = arith.constant 0 : index
    %11 = vector.load %arg1[%c1097, %c0_8] : memref<1104x416xf32, #tpu.memory_space<vmem>>, vector<1x288xf32>
    %cst_9 = arith.constant dense<0.000000e+00> : vector<2x288xf32>
    %12 = tpu.matmul %9, %10, %cst_9 {dimension_numbers = #tpu.dot_dimension_numbers<[1], [0], [0], [1], [0, 0, 1, 1], [], []>} : vector<2x416xf32>, vector<416x288xf32>, vector<2x288xf32> -> vector<2x288xf32>
    %13 = vector.broadcast %11 : vector<1x288xf32> to vector<2x288xf32>
    %14 = arith.addf %12, %13 : vector<2x288xf32>
    %cst_10 = arith.constant 0.000000e+00 : f32
    %15 = vector.broadcast %cst_10 : f32 to vector<2x288xf32>
    %16 = arith.maximumf %14, %15 : vector<2x288xf32>
    %c488 = arith.constant 488 : index
    %c0_11 = arith.constant 0 : index
    %17 = vector.load %arg1[%c488, %c0_11] : memref<1104x416xf32, #tpu.memory_space<vmem>>, vector<288x160xf32>
    %c1098 = arith.constant 1098 : index
    %c0_12 = arith.constant 0 : index
    %18 = vector.load %arg1[%c1098, %c0_12] : memref<1104x416xf32, #tpu.memory_space<vmem>>, vector<1x160xf32>
    %cst_13 = arith.constant dense<0.000000e+00> : vector<2x160xf32>
    %19 = tpu.matmul %16, %17, %cst_13 {dimension_numbers = #tpu.dot_dimension_numbers<[1], [0], [0], [1], [0, 0, 1, 1], [], []>} : vector<2x288xf32>, vector<288x160xf32>, vector<2x160xf32> -> vector<2x160xf32>
    %20 = vector.broadcast %18 : vector<1x160xf32> to vector<2x160xf32>
    %21 = arith.addf %19, %20 : vector<2x160xf32>
    %cst_14 = arith.constant 0.000000e+00 : f32
    %22 = vector.broadcast %cst_14 : f32 to vector<2x160xf32>
    %23 = arith.maximumf %21, %22 : vector<2x160xf32>
    %c776 = arith.constant 776 : index
    %c0_15 = arith.constant 0 : index
    %24 = vector.load %arg1[%c776, %c0_15] : memref<1104x416xf32, #tpu.memory_space<vmem>>, vector<160x32xf32>
    %c1099 = arith.constant 1099 : index
    %c0_16 = arith.constant 0 : index
    %25 = vector.load %arg1[%c1099, %c0_16] : memref<1104x416xf32, #tpu.memory_space<vmem>>, vector<1x32xf32>
    %cst_17 = arith.constant dense<0.000000e+00> : vector<2x32xf32>
    %26 = tpu.matmul %23, %24, %cst_17 {dimension_numbers = #tpu.dot_dimension_numbers<[1], [0], [0], [1], [0, 0, 1, 1], [], []>} : vector<2x160xf32>, vector<160x32xf32>, vector<2x32xf32> -> vector<2x32xf32>
    %27 = vector.broadcast %25 : vector<1x32xf32> to vector<2x32xf32>
    %28 = arith.addf %26, %27 : vector<2x32xf32>
    %cst_18 = arith.constant 0.000000e+00 : f32
    %29 = vector.broadcast %cst_18 : f32 to vector<2x32xf32>
    %30 = arith.maximumf %28, %29 : vector<2x32xf32>
    %c936 = arith.constant 936 : index
    %c0_19 = arith.constant 0 : index
    %31 = vector.load %arg1[%c936, %c0_19] : memref<1104x416xf32, #tpu.memory_space<vmem>>, vector<32x128xf32>
    %c968 = arith.constant 968 : index
    %c0_20 = arith.constant 0 : index
    %32 = vector.load %arg1[%c968, %c0_20] : memref<1104x416xf32, #tpu.memory_space<vmem>>, vector<32x128xf32>
    %c1100 = arith.constant 1100 : index
    %c0_21 = arith.constant 0 : index
    %33 = vector.load %arg1[%c1100, %c0_21] : memref<1104x416xf32, #tpu.memory_space<vmem>>, vector<1x128xf32>
    %cst_22 = arith.constant dense<0.000000e+00> : vector<2x128xf32>
    %34 = tpu.matmul %30, %31, %cst_22 {dimension_numbers = #tpu.dot_dimension_numbers<[1], [0], [0], [1], [0, 0, 1, 1], [], []>} : vector<2x32xf32>, vector<32x128xf32>, vector<2x128xf32> -> vector<2x128xf32>
    %cst_23 = arith.constant dense<0.000000e+00> : vector<2x128xf32>
    %35 = tpu.matmul %1, %32, %cst_23 {dimension_numbers = #tpu.dot_dimension_numbers<[1], [0], [0], [1], [0, 0, 1, 1], [], []>} : vector<2x32xf32>, vector<32x128xf32>, vector<2x128xf32> -> vector<2x128xf32>
    %36 = arith.addf %34, %35 : vector<2x128xf32>
    %37 = vector.broadcast %33 : vector<1x128xf32> to vector<2x128xf32>
    %38 = arith.addf %36, %37 : vector<2x128xf32>
    %39 = arith.negf %38 : vector<2x128xf32>
    %40 = math.exp %39 : vector<2x128xf32>
    %cst_24 = arith.constant 1.000000e+00 : f32
    %41 = vector.broadcast %cst_24 : f32 to vector<2x128xf32>
    %42 = arith.addf %41, %40 : vector<2x128xf32>
    %43 = arith.divf %41, %42 : vector<2x128xf32>
    %44 = math.tanh %38 : vector<2x128xf32>
    %45 = vector.extract_strided_slice %43 {offsets = [0, 0], sizes = [2, 32], strides = [1, 1]} : vector<2x128xf32> to vector<2x32xf32>
    %46 = vector.extract_strided_slice %43 {offsets = [0, 32], sizes = [2, 32], strides = [1, 1]} : vector<2x128xf32> to vector<2x32xf32>
    %47 = vector.extract_strided_slice %44 {offsets = [0, 64], sizes = [2, 32], strides = [1, 1]} : vector<2x128xf32> to vector<2x32xf32>
    %48 = vector.extract_strided_slice %43 {offsets = [0, 96], sizes = [2, 32], strides = [1, 1]} : vector<2x128xf32> to vector<2x32xf32>
    %49 = arith.mulf %46, %2 : vector<2x32xf32>
    %50 = arith.mulf %45, %47 : vector<2x32xf32>
    %51 = arith.addf %49, %50 : vector<2x32xf32>
    %52 = math.tanh %51 : vector<2x32xf32>
    %53 = arith.mulf %48, %52 : vector<2x32xf32>
    %c1000 = arith.constant 1000 : index
    %c0_25 = arith.constant 0 : index
    %54 = vector.load %arg1[%c1000, %c0_25] : memref<1104x416xf32, #tpu.memory_space<vmem>>, vector<32x128xf32>
    %c1032 = arith.constant 1032 : index
    %c0_26 = arith.constant 0 : index
    %55 = vector.load %arg1[%c1032, %c0_26] : memref<1104x416xf32, #tpu.memory_space<vmem>>, vector<32x128xf32>
    %c1101 = arith.constant 1101 : index
    %c0_27 = arith.constant 0 : index
    %56 = vector.load %arg1[%c1101, %c0_27] : memref<1104x416xf32, #tpu.memory_space<vmem>>, vector<1x128xf32>
    %cst_28 = arith.constant dense<0.000000e+00> : vector<2x128xf32>
    %57 = tpu.matmul %53, %54, %cst_28 {dimension_numbers = #tpu.dot_dimension_numbers<[1], [0], [0], [1], [0, 0, 1, 1], [], []>} : vector<2x32xf32>, vector<32x128xf32>, vector<2x128xf32> -> vector<2x128xf32>
    %cst_29 = arith.constant dense<0.000000e+00> : vector<2x128xf32>
    %58 = tpu.matmul %53, %55, %cst_29 {dimension_numbers = #tpu.dot_dimension_numbers<[1], [0], [0], [1], [0, 0, 1, 1], [], []>} : vector<2x32xf32>, vector<32x128xf32>, vector<2x128xf32> -> vector<2x128xf32>
    %59 = arith.addf %57, %58 : vector<2x128xf32>
    %60 = vector.broadcast %56 : vector<1x128xf32> to vector<2x128xf32>
    %61 = arith.addf %59, %60 : vector<2x128xf32>
    %62 = arith.negf %61 : vector<2x128xf32>
    %63 = math.exp %62 : vector<2x128xf32>
    %cst_30 = arith.constant 1.000000e+00 : f32
    %64 = vector.broadcast %cst_30 : f32 to vector<2x128xf32>
    %65 = arith.addf %64, %63 : vector<2x128xf32>
    %66 = arith.divf %64, %65 : vector<2x128xf32>
    %67 = math.tanh %61 : vector<2x128xf32>
    %68 = vector.extract_strided_slice %66 {offsets = [0, 0], sizes = [2, 32], strides = [1, 1]} : vector<2x128xf32> to vector<2x32xf32>
    %69 = vector.extract_strided_slice %66 {offsets = [0, 32], sizes = [2, 32], strides = [1, 1]} : vector<2x128xf32> to vector<2x32xf32>
    %70 = vector.extract_strided_slice %67 {offsets = [0, 64], sizes = [2, 32], strides = [1, 1]} : vector<2x128xf32> to vector<2x32xf32>
    %71 = vector.extract_strided_slice %66 {offsets = [0, 96], sizes = [2, 32], strides = [1, 1]} : vector<2x128xf32> to vector<2x32xf32>
    %72 = arith.mulf %69, %51 : vector<2x32xf32>
    %73 = arith.mulf %68, %70 : vector<2x32xf32>
    %74 = arith.addf %72, %73 : vector<2x32xf32>
    %75 = math.tanh %74 : vector<2x32xf32>
    %76 = arith.mulf %71, %75 : vector<2x32xf32>
    %c1064 = arith.constant 1064 : index
    %c0_31 = arith.constant 0 : index
    %77 = vector.load %arg1[%c1064, %c0_31] : memref<1104x416xf32, #tpu.memory_space<vmem>>, vector<32x8xf32>
    %c1102 = arith.constant 1102 : index
    %c0_32 = arith.constant 0 : index
    %78 = vector.load %arg1[%c1102, %c0_32] : memref<1104x416xf32, #tpu.memory_space<vmem>>, vector<1x8xf32>
    %cst_33 = arith.constant dense<0.000000e+00> : vector<2x8xf32>
    %79 = tpu.matmul %76, %77, %cst_33 {dimension_numbers = #tpu.dot_dimension_numbers<[1], [0], [0], [1], [0, 0, 1, 1], [], []>} : vector<2x32xf32>, vector<32x8xf32>, vector<2x8xf32> -> vector<2x8xf32>
    %80 = vector.broadcast %78 : vector<1x8xf32> to vector<2x8xf32>
    %81 = arith.addf %79, %80 : vector<2x8xf32>
    %cst_34 = arith.constant 0.000000e+00 : f32
    %82 = vector.broadcast %cst_34 : f32 to vector<2x24xf32>
    %cst_35 = arith.constant 0.000000e+00 : f32
    %83 = vector.broadcast %cst_35 : f32 to vector<2x32xf32>
    %84 = tpu.concatenate %81, %82, %76, %74, %83 in 1 : vector<2x8xf32>, vector<2x24xf32>, vector<2x32xf32>, vector<2x32xf32>, vector<2x32xf32> -> vector<2x128xf32>
    %c0_36 = arith.constant 0 : index
    %c0_37 = arith.constant 0 : index
    %85 = vector.load %arg2[%c0_36, %c0_37] : memref<2x128xf32, #tpu.memory_space<vmem>>, vector<2x128xf32>
    tpu.vector_store %arg2[%c0_36, %c0_37], %84 {strides = array<i32>} : memref<2x128xf32, #tpu.memory_space<vmem>>, vector<2x128xf32>,
    return
  }
}

</mosaic_0001>

<bundles_post_ra>
// kernel: har_forward.1
= control target key start
LH: loop header
LB: loop body
LE: loop exit
PB: predicated region body
PF: predicated region fallthrough
CT: control target
= control target key end

     0   :  { %v1982_v3 = vmov 0.0   ;;  %vm77_vm0 = vcmask 1043456   ;;  %vm73_vm1 = vcmask 556032   ;;  %vm410_vm2 = vcmask 261120   ;;  %s1985_s19 = smov 64   ;;  %s1986_s22 = smov 32   ;;  %s3046_s1 = inlined_call_operand.vmem [shape: f32[1104,416], index: 1, kind: input, shape index: {}]   ;;  %s3047_s0 = inlined_call_operand.vmem [shape: f32[24,128], index: 0, kind: input, shape index: {}]   ;;  %s3048_s2 = inlined_call_operand.vmem [shape: f32[2,128], index: 2, kind: output, shape index: {}]  }
   0x1   :  { %v15_v0 = vld [vmem:[%s3046_s1 + $0x8] sm:$0xff]  ;;  %v14_v2 = vld [vmem:[%s3046_s1] sm:$0xff]  ;;  %154 = vmatprep.mubr.f32.mxu0 %v1982_v3  ;;  %225 = vmatprep.mubr.f32.mxu1 %v1982_v3  ;;  %v17_v20 = vld [vmem:[%s3046_s1 + $0x18] sm:$0xff]  ;;  %vm1984_vm3 = vmmov 0   ;;  %vm1476_vm4 = vcmask 64512   ;;  %vm1479_vm5 = vcmask 523264  }
   0x2   :  { %v19_v1 = vld [vmem:[%s3046_s1 + $0x28] sm:$0xff]  ;;  %v18_v5 = vld [vmem:[%s3046_s1 + $0x20] sm:$0xff]  ;;  %v21_v21 = vld [vmem:[%s3046_s1 + $0x38] sm:$0xff]  ;;  %vm1481_vm6 = vcmask 785408  }
   0x3   :  { %v1623_v4 = vpack.c.bf16 %v19_v1, %v15_v0  ;;  %v23_v6 = vld [vmem:[%s3046_s1 + $0x48] sm:$0xff]  ;;  %v1625_v8 = vpack.c.bf16 %v18_v5, %v14_v2  ;;  %v22_v10 = vld [vmem:[%s3046_s1 + $0x40] sm:$0xff]  ;;  %v1639_v23 = vpack.c.bf16 %v21_v21, %v17_v20  ;;  %v16_v24 = vld [vmem:[%s3046_s1 + $0x10] sm:$0xff] }
   0x4   :  { %v27_v7 = vld [vmem:[%s3046_s1 + $0x68] sm:$0xff]  ;;  %v26_v11 = vld [vmem:[%s3046_s1 + $0x60] sm:$0xff]  ;;  %v20_v25 = vld [vmem:[%s3046_s1 + $0x30] sm:$0xff] }
   0x5   :  { %v1627_v9 = vpack.c.bf16 %v27_v7, %v23_v6  ;;  %v31_v12 = vld [vmem:[%s3046_s1 + $0x88] sm:$0xff]  ;;  %1624 = vmatprep.subr.bf16.mxu0 %v1623_v4  ;;  %v1629_v14 = vpack.c.bf16 %v26_v11, %v22_v10  ;;  %v30_v16 = vld [vmem:[%s3046_s1 + $0x80] sm:$0xff]  ;;  %v25_v26 = vld [vmem:[%s3046_s1 + $0x58] sm:$0xff]  ;;  %v1641_v28 = vpack.c.bf16 %v20_v25, %v16_v24  ;;  %1640 = vmatprep.subr.bf16.mxu1 %v1639_v23 }
   0x6   :  { %v35_v13 = vld [vmem:[%s3046_s1 + $0xa8] sm:$0xff]  ;;  %1626 = vmatpush1.bf16.msra.mxu0 %v1625_v8  ;;  %v34_v17 = vld [vmem:[%s3046_s1 + $0xa0] sm:$0xff]  ;;  %v29_v29 = vld [vmem:[%s3046_s1 + $0x78] sm:$0xff] }
   0x7   :  { %1628 = vmatprep.subr.bf16.mxu0 %v1627_v9  ;;  %v1631_v15 = vpack.c.bf16 %v35_v13, %v31_v12  ;;  %v39_v18 = vld [vmem:[%s3046_s1 + $0xc8] sm:$0xff]  ;;  %v38_v22 = vld [vmem:[%s3046_s1 + $0xc0] sm:$0xff]  ;;  %v1633_v27 = vpack.c.bf16 %v34_v17, %v30_v16  ;;  %v24_v30 = vld [vmem:[%s3046_s1 + $0x50] sm:$0xff]  ;;  %v1643_v34 = vpack.c.bf16 %v29_v29, %v25_v26  ;;  %1642 = vmatpush1.bf16.msra.mxu1 %v1641_v28 }
   0x8   :  { %v43_v19 = vld [vmem:[%s3046_s1 + $0xe8] sm:$0xff]  ;;  %v28_v31 = vld [vmem:[%s3046_s1 + $0x70] sm:$0xff]  ;;  %v42_v33 = vld [vmem:[%s3046_s1 + $0xe0] sm:$0xff] }
   0x9   :  { %v1635_v32 = vpack.c.bf16 %v43_v19, %v39_v18  ;;  %v33_v35 = vld [vmem:[%s3046_s1 + $0x98] sm:$0xff]  ;;  %v1645_v37 = vpack.c.bf16 %v28_v31, %v24_v30  ;;  %1644 = vmatprep.subr.bf16.mxu1 %v1643_v34  ;;  %v32_v39 = vld [vmem:[%s3046_s1 + $0x90] sm:$0xff]  ;;  %v1637_v41 = vpack.c.bf16 %v42_v33, %v38_v22  ;;  %v47_v44 = vld [vmem:[%s3046_s1 + $0x108] sm:$0xf] }
   0xa   :  { %1630 = vmatpush1.bf16.msra.mxu0 %v1629_v14  ;;  %v37_v36 = vld [vmem:[%s3046_s1 + $0xb8] sm:$0xff]  ;;  %v36_v40 = vld [vmem:[%s3046_s1 + $0xb0] sm:$0xff]  ;;  %v237_v47 = vld [vmem:[%s3046_s1 + $0x128] sm:$0xff] }
   0xb   :  { %1632 = vmatprep.subr.bf16.mxu0 %v1631_v15  ;;  %v1647_v38 = vpack.c.bf16 %v37_v36, %v33_v35  ;;  %v41_v42 = vld [vmem:[%s3046_s1 + $0xd8] sm:$0xff]  ;;  %1646 = vmatpush1.bf16.msra.mxu1 %v1645_v37  ;;  %v1649_v45 = vpack.c.bf16 %v36_v40, %v32_v39  ;;  %v40_v46 = vld [vmem:[%s3046_s1 + $0xd0] sm:$0xff]  ;;  %v240_v48 = vld [vmem:[%s3046_s1 + $0x148] sm:$0xff] }
   0xc   :  { %v45_v43 = vld [vmem:[%s3046_s1 + $0xf8] sm:$0xff]  ;;  %v44_v50 = vld [vmem:[%s3046_s1 + $0xf0] sm:$0xff]  ;;  %v236_v51 = vld [vmem:[%s3046_s1 + $0x120] sm:$0xff]  ;;  %v1655_v56 = vpack.c.bf16 %v240_v48, %v237_v47 }
   0xd   :  { %1648 = vmatprep.subr.bf16.mxu1 %v1647_v38  ;;  %v1651_v49 = vpack.c.bf16 %v45_v43, %v41_v42  ;;  %v239_v52 = vld [vmem:[%s3046_s1 + $0x140] sm:$0xff]  ;;  %v243_v53 = vld [vmem:[%s3046_s1 + $0x168] sm:$0xff]  ;;  %v1653_v58 = vpack.c.bf16 %v44_v50, %v40_v46  ;;  %v49_v63 = vld [vmem:[%s3046_s1 + $0x118] sm:$0xf] }
   0xe   :  { %1634 = vmatpush1.bf16.msra.mxu0 %v1633_v27  ;;  %v246_v54 = vld [vmem:[%s3046_s1 + $0x188] sm:$0xff]  ;;  %v46_v55 = vld [vmem:[%s3046_s1 + $0x100] sm:$0xf]  ;;  %v1657_v59 = vpack.c.bf16 %v239_v52, %v236_v51  ;;  %v48_v2 = vld [vmem:[%s3046_s1 + $0x110] sm:$0xf] }
   0xf   :  { %1636 = vmatprep.subr.bf16.mxu0 %v1635_v32  ;;  %v11_v57 = vld [vmem:[%s3047_s0] sm:$0x3]  ;;  %1650 = vmatpush1.bf16.msra.mxu1 %v1649_v45  ;;  %v1659_v60 = vpack.c.bf16 %v246_v54, %v243_v53  ;;  %v249_v0 = vld [vmem:[%s3046_s1 + $0x1a8] sm:$0xff]  ;;  %v286_v8 = vld [vmem:[%s3046_s1 + $0x330] sm:$0xff] }
  0x10   :  { %1652 = vmatprep.subr.bf16.mxu1 %v1651_v49  ;;  %v242_v61 = vld [vmem:[%s3046_s1 + $0x160] sm:$0xff]  ;;  %v252_v1 = vld [vmem:[%s3046_s1 + $0x1c8] sm:$0xff]  ;;  %v289_v11 = vld [vmem:[%s3046_s1 + $0x350] sm:$0xff] }
  0x11   :  { %v245_v62 = vld [vmem:[%s3046_s1 + $0x180] sm:$0xff]  ;;  %v1663_v5 = vpack.c.bf16 %v252_v1, %v249_v0  ;;  %v255_v9 = vld [vmem:[%s3046_s1 + $0x1e8] sm:$0xff]  ;;  %v1759_v12 = vpack.c.bf16 %v289_v11, %v286_v8  ;;  %v238_v13 = vld [vmem:[%s3046_s1 + $0x130] sm:$0xff] }
  0x12   :  { %1638 = vmatpush1.bf16.msra.mxu0 %v1637_v41  ;;  %v1661_v4 = vpack.c.bf16 %v245_v62, %v242_v61  ;;  %v248_v6 = vld [vmem:[%s3046_s1 + $0x1a0] sm:$0xff]  ;;  %v258_v10 = vld [vmem:[%s3046_s1 + $0x208] sm:$0xff]  ;;  %v241_v14 = vld [vmem:[%s3046_s1 + $0x150] sm:$0xff] }
  0x13   :  { %1489 = vmatprep.subr.msk.mxu0 %vm77_vm0, %v47_v44  ;;  %1654 = vmatpush1.bf16.msra.mxu1 %v1653_v58  ;;  %v251_v7 = vld [vmem:[%s3046_s1 + $0x1c0] sm:$0xff]  ;;  %v1761_v16 = vpack.c.bf16 %v241_v14, %v238_v13  ;;  %v292_v17 = vld [vmem:[%s3046_s1 + $0x370] sm:$0xff]  ;;  %v1667_v19 = vpack.c.bf16 %v258_v10, %v255_v9  ;;  %v261_v24 = vld [vmem:[%s3046_s1 + $0x228] sm:$0xff] }
  0x14   :  { %1492 = vmatprep.subr.msk.mxu1 %vm77_vm0, %v49_v63  ;;  %v1665_v15 = vpack.c.bf16 %v251_v7, %v248_v6  ;;  %v295_v18 = vld [vmem:[%s3046_s1 + $0x390] sm:$0xff]  ;;  %v254_v20 = vld [vmem:[%s3046_s1 + $0x1e0] sm:$0xff]  ;;  %v264_v25 = vld [vmem:[%s3046_s1 + $0x248] sm:$0xff] }
  0x15   :  { %v257_v21 = vld [vmem:[%s3046_s1 + $0x200] sm:$0xff]  ;;  %v1763_v22 = vpack.c.bf16 %v295_v18, %v292_v17  ;;  %v244_v23 = vld [vmem:[%s3046_s1 + $0x170] sm:$0xff]  ;;  %v1671_v34 = vpack.c.bf16 %v264_v25, %v261_v24  ;;  %v267_v38 = vld [vmem:[%s3046_s1 + $0x268] sm:$0xff] }
  0x16   :  { %1490 = vmatpush1.msk.msra.mxu0 %vm77_vm0, %v46_v55  ;;  %v247_v26 = vld [vmem:[%s3046_s1 + $0x190] sm:$0xff]  ;;  %v1669_v30 = vpack.c.bf16 %v257_v21, %v254_v20  ;;  %v260_v35 = vld [vmem:[%s3046_s1 + $0x220] sm:$0xff]  ;;  %v270_v39 = vld [vmem:[%s3046_s1 + $0x288] sm:$0xff] }
  0x17   :  { %1491 = vmatmul.mubr.msk.f32.vlgmr.msra.gmra.mrb[0].mxu0 %vm73_vm1, %v11_v57  ;;  %1656 = vmatprep.subr.bf16.mxu0 %v1655_v56  ;;  %v1765_v27 = vpack.c.bf16 %v247_v26, %v244_v23  ;;  %v298_v28 = vld [vmem:[%s3046_s1 + $0x3b0] sm:$0xff]  ;;  %v263_v36 = vld [vmem:[%s3046_s1 + $0x240] sm:$0xff]  ;;  %v1675_v47 = vpack.c.bf16 %v270_v39, %v267_v38  ;;  %v273_v51 = vld [vmem:[%s3046_s1 + $0x2a8] sm:$0xff] }
  0x18   :  { %1658 = vmatpush1.bf16.msra.mxu0 %v1657_v59  ;;  %1493 = vmatpush1.msk.msra.mxu1 %vm77_vm0, %v48_v2  ;;  %v301_v29 = vld [vmem:[%s3046_s1 + $0x3d0] sm:$0xff]  ;;  %v1673_v42 = vpack.c.bf16 %v263_v36, %v260_v35  ;;  %v266_v43 = vld [vmem:[%s3046_s1 + $0x260] sm:$0xff]  ;;  %v276_v52 = vld [vmem:[%s3046_s1 + $0x2c8] sm:$0xff] }
  0x19   :  { %1660 = vmatprep.subr.bf16.mxu0 %v1659_v60  ;;  %1494 = vmatmul.mubr.msk.f32.vlgmr.msra.gmra.mrb[0].mxu1 %vm73_vm1, %v11_v57  ;;  %v1767_v31 = vpack.c.bf16 %v301_v29, %v298_v28  ;;  %v250_v32 = vld [vmem:[%s3046_s1 + $0x1b0] sm:$0xff]  ;;  %v269_v48 = vld [vmem:[%s3046_s1 + $0x280] sm:$0xff]  ;;  %v1679_v59 = vpack.c.bf16 %v276_v52, %v273_v51  ;;  %v279_v63 = vld [vmem:[%s3046_s1 + $0x2e8] sm:$0xff] }
  0x1a   :  { %1760 = vmatprep.subr.bf16.mxu1 %v1759_v12  ;;  %v253_v33 = vld [vmem:[%s3046_s1 + $0x1d0] sm:$0xff]  ;;  %v1677_v54 = vpack.c.bf16 %v269_v48, %v266_v43  ;;  %v272_v55 = vld [vmem:[%s3046_s1 + $0x2a0] sm:$0xff]  ;;  %v282_v0 = vld [vmem:[%s3046_s1 + $0x308] sm:$0xff] }
  0x1b   :  { %1762 = vmatpush3.bf16.msra.mxu1 %v1761_v16  ;;  %v304_v37 = vld [vmem:[%s3046_s1 + $0x3f0] sm:$0xff]  ;;  %v1769_v41 = vpack.c.bf16 %v253_v33, %v250_v32  ;;  %v275_v60 = vld [vmem:[%s3046_s1 + $0x2c0] sm:$0xff]  ;;  %v1683_v8 = vpack.c.bf16 %v282_v0, %v279_v63  ;;  %v285_v12 = vld [vmem:[%s3046_s1 + $0x328] sm:$0xff] }
  0x1c   :  { %1662 = vmatpush1.bf16.msra.mxu0 %v1661_v4  ;;  %1764 = vmatprep.subr.bf16.mxu1 %v1763_v22  ;;  %v307_v40 = vld [vmem:[%s3046_s1 + $0x410] sm:$0xff]  ;;  %v1681_v2 = vpack.c.bf16 %v275_v60, %v272_v55  ;;  %v278_v4 = vld [vmem:[%s3046_s1 + $0x2e0] sm:$0xff]  ;;  %v288_v13 = vld [vmem:[%s3046_s1 + $0x348] sm:$0xff] }
  0x1d   :  { %1664 = vmatprep.subr.bf16.mxu0 %v1663_v5  ;;  %v1771_v44 = vpack.c.bf16 %v307_v40, %v304_v37  ;;  %v256_v45 = vld [vmem:[%s3046_s1 + $0x1f0] sm:$0xff]  ;;  %v281_v9 = vld [vmem:[%s3046_s1 + $0x300] sm:$0xff]  ;;  %v291_v22 = vld [vmem:[%s3046_s1 + $0x368] sm:$0xff] }
  0x1e   :  { %v259_v46 = vld [vmem:[%s3046_s1 + $0x210] sm:$0xff]  ;;  %v284_v20 = vld [vmem:[%s3046_s1 + $0x320] sm:$0xff]  ;;  %v294_v23 = vld [vmem:[%s3046_s1 + $0x388] sm:$0xff] }
  0x1f   :  { %1766 = vmatpush3.bf16.msra.mxu1 %v1765_v27  ;;  %v310_v49 = vld [vmem:[%s3046_s1 + $0x430] sm:$0xff]  ;;  %v1773_v53 = vpack.c.bf16 %v259_v46, %v256_v45  ;;  %v287_v21 = vld [vmem:[%s3046_s1 + $0x340] sm:$0xff]  ;;  %v1691_v26 = vpack.c.bf16 %v294_v23, %v291_v22  ;;  %v297_v29 = vld [vmem:[%s3046_s1 + $0x3a8] sm:$0xff] }
  0x20   :  { %1666 = vmatpush1.bf16.msra.mxu0 %v1665_v15  ;;  %1768 = vmatprep.subr.bf16.mxu1 %v1767_v31  ;;  %v313_v50 = vld [vmem:[%s3046_s1 + $0x450] sm:$0xff]  ;;  %v1685_v15 = vpack.c.bf16 %v281_v9, %v278_v4  ;;  %v1689_v25 = vpack.c.bf16 %v287_v21, %v284_v20  ;;  %v290_v27 = vld [vmem:[%s3046_s1 + $0x360] sm:$0xff]  ;;  %v303_v35 = vld [vmem:[%s3046_s1 + $0x3e8] sm:$0xff] }
  0x21   :  { %1668 = vmatprep.subr.bf16.mxu0 %v1667_v19  ;;  %v1775_v56 = vpack.c.bf16 %v313_v50, %v310_v49  ;;  %v262_v57 = vld [vmem:[%s3046_s1 + $0x230] sm:$0xff]  ;;  %v1687_v19 = vpack.c.bf16 %v288_v13, %v285_v12  ;;  %v293_v28 = vld [vmem:[%s3046_s1 + $0x380] sm:$0xff]  ;;  %v306_v36 = vld [vmem:[%s3046_s1 + $0x408] sm:$0xff]  ;;  %v1983_v12 = vmov 0.0|0.0   ;;  %v53_v13 = vlaneseq }
  0x22   :  { %v265_v58 = vld [vmem:[%s3046_s1 + $0x250] sm:$0xff]  ;;  %v1693_v31 = vpack.c.bf16 %v293_v28, %v290_v27  ;;  %v296_v33 = vld [vmem:[%s3046_s1 + $0x3a0] sm:$0xff]  ;;  %v1699_v38 = vpack.c.bf16 %v306_v36, %v303_v35  ;;  %v318_v48 = vld [vmem:[%s3046_s1 + $0x488] sm:$0xff] }
  0x23   :  { %1770 = vmatpush3.bf16.msra.mxu1 %v1769_v41  ;;  %v316_v61 = vld [vmem:[%s3046_s1 + $0x470] sm:$0xff]  ;;  %v1777_v1 = vpack.c.bf16 %v265_v58, %v262_v57  ;;  %v302_v39 = vld [vmem:[%s3046_s1 + $0x3e0] sm:$0xff]  ;;  %v309_v41 = vld [vmem:[%s3046_s1 + $0x428] sm:$0xff] }
  0x24   :  { %1670 = vmatpush1.bf16.msra.mxu0 %v1669_v30  ;;  %1772 = vmatprep.subr.bf16.mxu1 %v1771_v44  ;;  %v319_v62 = vld [vmem:[%s3046_s1 + $0x490] sm:$0xff]  ;;  %v300_v30 = vld [vmem:[%s3046_s1 + $0x3c8] sm:$0xff]  ;;  %v305_v40 = vld [vmem:[%s3046_s1 + $0x400] sm:$0xff] }
  0x25   :  { %1672 = vmatprep.subr.bf16.mxu0 %v1671_v34  ;;  %v1779_v5 = vpack.c.bf16 %v319_v62, %v316_v61  ;;  %v268_v6 = vld [vmem:[%s3046_s1 + $0x270] sm:$0xff]  ;;  %v1695_v32 = vpack.c.bf16 %v300_v30, %v297_v29  ;;  %v299_v34 = vld [vmem:[%s3046_s1 + $0x3c0] sm:$0xff]  ;;  %v1701_v43 = vpack.c.bf16 %v305_v40, %v302_v39  ;;  %v327_v60 = vld [vmem:[%s3046_s1 + $0x4e8] sm:$0xff] }
  0x26   :  { %v271_v7 = vld [vmem:[%s3046_s1 + $0x290] sm:$0xff]  ;;  %v1697_v37 = vpack.c.bf16 %v299_v34, %v296_v33  ;;  %v308_v45 = vld [vmem:[%s3046_s1 + $0x420] sm:$0xff]  ;;  %v330_v61 = vld [vmem:[%s3046_s1 + $0x508] sm:$0xff] }
  0x27   :  { %1774 = vmatpush3.bf16.msra.mxu1 %v1773_v53  ;;  %v322_v10 = vld [vmem:[%s3046_s1 + $0x4b0] sm:$0xff]  ;;  %v1781_v14 = vpack.c.bf16 %v271_v7, %v268_v6  ;;  %v311_v46 = vld [vmem:[%s3046_s1 + $0x440] sm:$0xff]  ;;  %v321_v53 = vld [vmem:[%s3046_s1 + $0x4a8] sm:$0xff]  ;;  %v1715_v63 = vpack.c.bf16 %v330_v61, %v327_v60 }
  0x28   :  { %1674 = vmatpush1.bf16.msra.mxu0 %v1673_v42  ;;  %1776 = vmatprep.subr.bf16.mxu1 %v1775_v56  ;;  %v325_v11 = vld [vmem:[%s3046_s1 + $0x4d0] sm:$0xff]  ;;  %v312_v42 = vld [vmem:[%s3046_s1 + $0x448] sm:$0xff]  ;;  %v1705_v49 = vpack.c.bf16 %v311_v46, %v308_v45  ;;  %v314_v51 = vld [vmem:[%s3046_s1 + $0x460] sm:$0xff] }
  0x29   :  { %1676 = vmatprep.subr.bf16.mxu0 %v1675_v47  ;;  %v1783_v16 = vpack.c.bf16 %v325_v11, %v322_v10  ;;  %v274_v17 = vld [vmem:[%s3046_s1 + $0x2b0] sm:$0xff]  ;;  %v1703_v44 = vpack.c.bf16 %v312_v42, %v309_v41  ;;  %v315_v47 = vld [vmem:[%s3046_s1 + $0x468] sm:$0xff]  ;;  %v317_v52 = vld [vmem:[%s3046_s1 + $0x480] sm:$0xff] }
  0x2a   :  { %v277_v18 = vld [vmem:[%s3046_s1 + $0x2d0] sm:$0xff]  ;;  %v1707_v50 = vpack.c.bf16 %v318_v48, %v315_v47  ;;  %v1709_v55 = vpack.c.bf16 %v317_v52, %v314_v51  ;;  %v320_v57 = vld [vmem:[%s3046_s1 + $0x4a0] sm:$0xff]  ;;  %v333_v9 = vld [vmem:[%s3046_s1 + $0x528] sm:$0xff] }
  0x2b   :  { %1778 = vmatpush3.bf16.msra.mxu1 %v1777_v1  ;;  %v1785_v24 = vpack.c.bf16 %v277_v18, %v274_v17  ;;  %v323_v58 = vld [vmem:[%s3046_s1 + $0x4c0] sm:$0xff]  ;;  %v328_v62 = vld [vmem:[%s3046_s1 + $0x4f0] sm:$0xff]  ;;  %v336_v10 = vld [vmem:[%s3046_s1 + $0x548] sm:$0xff] }
  0x2c   :  { %1678 = vmatpush1.bf16.msra.mxu0 %v1677_v54  ;;  %1780 = vmatprep.subr.bf16.mxu1 %v1779_v5  ;;  %v324_v54 = vld [vmem:[%s3046_s1 + $0x4c8] sm:$0xff]  ;;  %v331_v0 = vld [vmem:[%s3046_s1 + $0x510] sm:$0xff]  ;;  %v326_v1 = vld [vmem:[%s3046_s1 + $0x4e0] sm:$0xff]  ;;  %v1719_v11 = vpack.c.bf16 %v336_v10, %v333_v9 }
  0x2d   :  { %1680 = vmatprep.subr.bf16.mxu0 %v1679_v59  ;;  %v1711_v56 = vpack.c.bf16 %v324_v54, %v321_v53  ;;  %v1713_v59 = vpack.c.bf16 %v323_v58, %v320_v57  ;;  %v1787_v4 = vpack.c.bf16 %v331_v0, %v328_v62  ;;  %v280_v6 = vld [vmem:[%s3046_s1 + $0x2f0] sm:$0xff]  ;;  %v332_v21 = vld [vmem:[%s3046_s1 + $0x520] sm:$0xff]  ;;  %v339_v29 = vld [vmem:[%s3046_s1 + $0x568] sm:$0xff] }
  0x2e   :  { %v283_v7 = vld [vmem:[%s3046_s1 + $0x310] sm:$0xff]  ;;  %v342_v30 = vld [vmem:[%s3046_s1 + $0x588] sm:$0xff]  ;;  %v338_v34 = vld [vmem:[%s3046_s1 + $0x560] sm:$0xff] }
  0x2f   :  { %1782 = vmatpush3.bf16.msra.mxu1 %v1781_v14  ;;  %v2416_v14 = vshrl.u32 %v53_v13, 7  ;;  %v337_v27 = vld [vmem:[%s3046_s1 + $0x550] sm:$0xff]  ;;  %v345_v41 = vld [vmem:[%s3046_s1 + $0x5a8] sm:$0xff]  ;;  %v344_v47 = vld [vmem:[%s3046_s1 + $0x5a0] sm:$0xff] }
  0x30   :  { %1682 = vmatpush1.bf16.msra.mxu0 %v1681_v2  ;;  %1784 = vmatprep.subr.bf16.mxu1 %v1783_v16  ;;  %v329_v2 = vld [vmem:[%s3046_s1 + $0x500] sm:$0xff]  ;;  %v340_v39 = vld [vmem:[%s3046_s1 + $0x570] sm:$0xff]  ;;  %v348_v42 = vld [vmem:[%s3046_s1 + $0x5c8] sm:$0xff] }
  0x31   :  { %1684 = vmatprep.subr.bf16.mxu0 %v1683_v8  ;;  %v1717_v5 = vpack.c.bf16 %v329_v2, %v326_v1  ;;  %v1789_v8 = vpack.c.bf16 %v283_v7, %v280_v6  ;;  %v2424_v16 = vld [vmem:[%s3046_s1 + $0x1120] ss:$8 sm:$0xf]  ;;  %v2427_v17 = vsub.s32 1, %v2416_v14  ;;  %v67_v22 = vsub.s32 3, %v2416_v14 }
  0x32   :  { %v343_v40 = vld [vmem:[%s3046_s1 + $0x590] sm:$0xff]  ;;  %v351_v53 = vld [vmem:[%s3046_s1 + $0x5e8] sm:$0xff]  ;;  %v350_v58 = vld [vmem:[%s3046_s1 + $0x5e0] sm:$0xff] }
  0x33   :  { %1786 = vmatpush3.bf16.msra.mxu1 %v1785_v24  ;;  %v68_v35 = vrot.slane %v2424_v16, %v67_v22  ;;  %v1795_v46 = vpack.c.bf16 %v343_v40, %v340_v39  ;;  %v346_v51 = vld [vmem:[%s3046_s1 + $0x5b0] sm:$0xff]  ;;  %v354_v54 = vld [vmem:[%s3046_s1 + $0x608] sm:$0xff]  ;;  %v353_v60 = vld [vmem:[%s3046_s1 + $0x600] sm:$0xff] }
  0x34   :  { %1686 = vmatpush1.bf16.msra.mxu0 %v1685_v15  ;;  %1788 = vmatprep.subr.bf16.mxu1 %v1787_v4  ;;  %v2419_v15 = vsub.s32 0, %v2416_v14  ;;  %v349_v52 = vld [vmem:[%s3046_s1 + $0x5d0] sm:$0xff]  ;;  %v360_v0 = vld [vmem:[%s3046_s1 + $0x648] sm:$0xff]  ;;  %v1733_v1 = vpack.c.bf16 %v353_v60, %v350_v58  ;;  %v356_v4 = vld [vmem:[%s3046_s1 + $0x620] sm:$0xff] }
  0x35   :  { %1688 = vmatprep.subr.bf16.mxu0 %v1687_v19  ;;  %v60_v19 = vrot.slane %v2424_v16, %v2427_v17  ;;  %v1798_v57 = vpack.c.bf16 %v349_v52, %v346_v51  ;;  %v352_v61 = vld [vmem:[%s3046_s1 + $0x5f0] sm:$0xff]  ;;  %v359_v6 = vld [vmem:[%s3046_s1 + $0x640] sm:$0xff]  ;;  %v363_v9 = vld [vmem:[%s3046_s1 + $0x668] sm:$0xff] }
  0x36   :  { %v56_v18 = vrot.slane %v2424_v16, %v2419_v15  ;;  %v355_v62 = vld [vmem:[%s3046_s1 + $0x610] sm:$0xff]  ;;  %v366_v10 = vld [vmem:[%s3046_s1 + $0x688] sm:$0xff] }
  0x37   :  { %1790 = vmatpush3.bf16.msra.mxu1 %v1789_v8  ;;  %v1801_v2 = vpack.c.bf16 %v355_v62, %v352_v61  ;;  %v358_v7 = vld [vmem:[%s3046_s1 + $0x630] sm:$0xff]  ;;  %v387_v52 = vld [vmem:[%s3046_s1 + $0x768] sm:$0xff] }
  0x38   :  { %1690 = vmatpush1.bf16.msra.mxu0 %v1689_v25  ;;  %1791 = vmatprep.subr.bf16.mxu1 %v1983_v12  ;;  %v335_v25 = vld [vmem:[%s3046_s1 + $0x540] sm:$0xff]  ;;  %v361_v8 = vld [vmem:[%s3046_s1 + $0x650] sm:$0xff]  ;;  %v702_v62 = vld [vmem:[%s3046_s1 + $0x7c8] sm:$0xff] }
  0x39   :  { %1692 = vmatprep.subr.bf16.mxu0 %v1691_v26  ;;  %v334_v26 = vld [vmem:[%s3046_s1 + $0x530] sm:$0xff]  ;;  %v1804_v13 = vpack.c.bf16 %v361_v8, %v358_v7 }
  0x3a   :  { %v1792_v33 = vpack.c.bf16 %v337_v27, %v334_v26  ;;  %v367_v22 = vld [vmem:[%s3046_s1 + $0x690] sm:$0xff]  ;;  %v368_v27 = vld [vmem:[%s3046_s1 + $0x6a0] sm:$0xff] }
  0x3b   :  { %v376_v39 = vld [vmem:[%s3046_s1 + $0x6f0] sm:$0xff] }
  0x3c   :  { %1694 = vmatpush1.bf16.msra.mxu0 %v1693_v31  ;;  %v379_v40 = vld [vmem:[%s3046_s1 + $0x710] sm:$0xff] }
  0x3d   :  { %1696 = vmatprep.subr.bf16.mxu0 %v1695_v32  ;;  %v1721_v32 = vpack.c.bf16 %v335_v25, %v332_v21  ;;  %v364_v21 = vld [vmem:[%s3046_s1 + $0x670] sm:$0xff] }
  0x3e   :  { %v1807_v26 = vpack.c.bf16 %v367_v22, %v364_v21  ;;  %v385_v51 = vld [vmem:[%s3046_s1 + $0x750] sm:$0xff]  ;;  %v707_v21 = vld [vmem:[%s3046_s1 + $0x820] sm:$0xff] }
  0x3f   :  { %v388_v60 = vld [vmem:[%s3046_s1 + $0x770] sm:$0xff]  ;;  %v709_v22 = vld [vmem:[%s3046_s1 + $0x840] sm:$0xff] }
  0x40   :  { %1698 = vmatpush1.bf16.msra.mxu0 %v1697_v37  ;;  %v1723_v37 = vpack.c.bf16 %v342_v30, %v339_v29  ;;  %v371_v29 = vld [vmem:[%s3046_s1 + $0x6c0] sm:$0xff]  ;;  %v370_v30 = vld [vmem:[%s3046_s1 + $0x6b0] sm:$0xff] }
  0x41   :  { %1700 = vmatprep.subr.bf16.mxu0 %v1699_v38  ;;  %v341_v38 = vld [vmem:[%s3046_s1 + $0x580] sm:$0xff]  ;;  %v391_v61 = vld [vmem:[%s3046_s1 + $0x790] sm:$0xff] }
  0x42   :  { %v1725_v45 = vpack.c.bf16 %v341_v38, %v338_v34  ;;  %v1745_v34 = vpack.c.bf16 %v371_v29, %v368_v27  ;;  %v377_v38 = vld [vmem:[%s3046_s1 + $0x700] sm:$0xff]  ;;  %v716_v29 = vld [vmem:[%s3046_s1 + $0x8a8] sm:$0xff] }
  0x43   :  { %v711_v27 = vld [vmem:[%s3046_s1 + $0x860] sm:$0xff] }
  0x44   :  { %1702 = vmatpush1.bf16.msra.mxu0 %v1701_v43 }
  0x45   :  { %1704 = vmatprep.subr.bf16.mxu0 %v1703_v44 }
  0x48   :  { %1706 = vmatpush1.bf16.msra.mxu0 %v1705_v49  ;;  %v1727_v49 = vpack.c.bf16 %v348_v42, %v345_v41  ;;  %v381_v41 = vld [vmem:[%s3046_s1 + $0x728] sm:$0xff] }
  0x49   :  { %1708 = vmatprep.subr.bf16.mxu0 %v1707_v50  ;;  %v347_v50 = vld [vmem:[%s3046_s1 + $0x5c0] sm:$0xff]  ;;  %v384_v42 = vld [vmem:[%s3046_s1 + $0x748] sm:$0xff] }
  0x4c   :  { %1710 = vmatpush1.bf16.msra.mxu0 %v1709_v55 }
  0x4d   :  { %1712 = vmatprep.subr.bf16.mxu0 %v1711_v56  ;;  %v1729_v56 = vpack.c.bf16 %v347_v50, %v344_v47  ;;  %v63_v47 = vsub.s32 2, %v2416_v14  ;;  %v382_v50 = vld [vmem:[%s3046_s1 + $0x730] sm:$0xff]  ;;  %v765_v14 = vld [vmem:[%s3046_s1 + $0xbc0] sm:$0xff] }
  0x50   :  { %1714 = vmatpush1.bf16.msra.mxu0 %v1713_v59  ;;  %v1731_v59 = vpack.c.bf16 %v354_v54, %v351_v53  ;;  %v390_v53 = vld [vmem:[%s3046_s1 + $0x788] sm:$0xff] }
  0x51   :  { %1716 = vmatprep.subr.bf16.mxu0 %v1715_v63  ;;  %v357_v63 = vld [vmem:[%s3046_s1 + $0x628] sm:$0xff]  ;;  %v1755_v58 = vpack.c.bf16 %v390_v53, %v387_v52  ;;  %v727_v53 = vld [vmem:[%s3046_s1 + $0x960] sm:$0xff] }
  0x54   :  { %1718 = vmatpush1.bf16.msra.mxu0 %v1717_v5  ;;  %v1735_v5 = vpack.c.bf16 %v360_v0, %v357_v63  ;;  %v1819_v0 = vpack.c.bf16 %v391_v61, %v388_v60  ;;  %v733_v60 = vld [vmem:[%s3046_s1 + $0x9c0] sm:$0xff]  ;;  %v736_v61 = vld [vmem:[%s3046_s1 + $0x9e8] sm:$0xff] }
  0x55   :  { %1720 = vmatprep.subr.bf16.mxu0 %v1719_v11  ;;  %v1737_v11 = vpack.c.bf16 %v359_v6, %v356_v4  ;;  %v699_v4 = vld [vmem:[%s3046_s1 + $0x7a0] sm:$0xff]  ;;  %v704_v6 = vld [vmem:[%s3046_s1 + $0x7e8] sm:$0xff] }
  0xea   :  { %v156_v20 = vpop.f32.mrb[0].mxu0 }
  0xeb   :  { %v157_v23 = vadd.f32 %v156_v20, %v56_v18  ;;  %v158_v24 = vpop.f32.mrb[1].mxu0  ;;  %v362_v18 = vld [vmem:[%s3046_s1 + $0x660] sm:$0xff] }
  0xec   :  { %v159_v28 = vadd.f32 %v158_v24, %v60_v19  ;;  %v2471_v43 = vpop.f32.mrb[0].mxu1  ;;  %v1739_v19 = vpack.c.bf16 %v366_v10, %v363_v9  ;;  %v365_v20 = vld [vmem:[%s3046_s1 + $0x680] sm:$0xff]  ;;  %v372_v24 = vld [vmem:[%s3046_s1 + $0x6c8] sm:$0xff] }
  0xed   :  { %v232_v36 = vmax.f32 %v157_v23, 0.0  ;;  %v229_v44 = vpop.f32.mrb[1].mxu1  ;;  %v369_v23 = vld [vmem:[%s3046_s1 + $0x6a8] sm:$0xff]  ;;  %v1741_v25 = vpack.c.bf16 %v365_v20, %v362_v18  ;;  %v703_v10 = vld [vmem:[%s3046_s1 + $0x7e0] sm:$0xff] }
  0xee   :  { %v233_v31 = vmax.f32 %v159_v28, 0.0  ;;  %v230_v48 = vadd.f32 %v229_v44, %v68_v35  ;;  %v1743_v28 = vpack.c.bf16 %v372_v24, %v369_v23  ;;  %v710_v18 = vld [vmem:[%s3046_s1 + $0x848] sm:$0xff] }
  0xef   :  { %v712_v23 = vld [vmem:[%s3046_s1 + $0x868] sm:$0xff] }
  0xf0   :  { %478 = vmatprep.mubr.f32.mxu0 %v233_v31  ;;  %620 = vmatprep.mubr.f32.mxu1 %v233_v31  ;;  %v235_v55 = vmax.f32 %v230_v48, 0.0  ;;  %v373_v31 = vld [vmem:[%s3046_s1 + $0x6d0] sm:$0xff]  ;;  %v1751_v48 = vpack.c.bf16 %v384_v42, %v381_v41  ;;  %v714_v24 = vld [vmem:[%s3046_s1 + $0x888] sm:$0xff] }
  0xf1   :  { %479 = vmatmul.mubr.f32.vlgmr.msra.gmra.mrb[2].mxu0 %v232_v36  ;;  %621 = vmatmul.mubr.f32.vlgmr.msra.gmra.mrb[2].mxu1 %v232_v36  ;;  %v1810_v35 = vpack.c.bf16 %v373_v31, %v370_v30  ;;  %v374_v36 = vld [vmem:[%s3046_s1 + $0x6e0] sm:$0xff]  ;;  %v718_v30 = vld [vmem:[%s3046_s1 + $0x8c8] sm:$0xff] }
  0xf2   :  { %1722 = vmatpush1.bf16.msra.mxu0 %v1721_v32  ;;  %1793 = vmatpush1.bf16.msra.mxu1 %v1792_v33  ;;  %v375_v32 = vld [vmem:[%s3046_s1 + $0x6e8] sm:$0xff]  ;;  %v1749_v44 = vpack.c.bf16 %v377_v38, %v374_v36 }
  0xf3   :  { %1724 = vmatprep.subr.bf16.mxu0 %v1723_v37  ;;  %1794 = vmatprep.subr.bf16.mxu1 %v1983_v12  ;;  %v378_v33 = vld [vmem:[%s3046_s1 + $0x708] sm:$0xff] }
  0xf4   :  { %1496 = vmatprep.mubr.msk.f32.mxu0 %vm410_vm2, %v235_v55  ;;  %1497 = vmatprep.mubr.msk.f32.mxu1 %vm410_vm2, %v235_v55  ;;  %v1747_v37 = vpack.c.bf16 %v378_v33, %v375_v32  ;;  %v1816_v55 = vpack.c.bf16 %v385_v51, %v382_v50  ;;  %v1837_v32 = vpack.c.bf16 %v718_v30, %v716_v29  ;;  %v715_v33 = vld [vmem:[%s3046_s1 + $0x8a0] sm:$0xff]  ;;  %v720_v36 = vld [vmem:[%s3046_s1 + $0x8e8] sm:$0xff] }
  0xf5   :  { %v724_v42 = vld [vmem:[%s3046_s1 + $0x928] sm:$0xff]  ;;  %v751_v29 = vld [vmem:[%s3046_s1 + $0xae0] sm:$0xff] }
  0xf6   :  { %1726 = vmatpush1.bf16.msra.mxu0 %v1725_v45  ;;  %1796 = vmatpush1.bf16.msra.mxu1 %v1795_v46  ;;  %v1813_v45 = vpack.c.bf16 %v379_v40, %v376_v39  ;;  %v380_v46 = vld [vmem:[%s3046_s1 + $0x720] sm:$0xff]  ;;  %v730_v50 = vld [vmem:[%s3046_s1 + $0x988] sm:$0xff] }
  0xf7   :  { %1728 = vmatprep.subr.bf16.mxu0 %v1727_v49  ;;  %1797 = vmatprep.subr.bf16.mxu1 %v1983_v12  ;;  %v383_v49 = vld [vmem:[%s3046_s1 + $0x740] sm:$0xff] }
  0xf8   :  { %v1753_v54 = vpack.c.bf16 %v383_v49, %v380_v46  ;;  %v719_v39 = vld [vmem:[%s3046_s1 + $0x8e0] sm:$0xff]  ;;  %v728_v49 = vld [vmem:[%s3046_s1 + $0x968] sm:$0xff] }
  0xf9   :  { %v721_v40 = vld [vmem:[%s3046_s1 + $0x900] sm:$0xff]  ;;  %v1849_v52 = vpack.c.bf16 %v730_v50, %v728_v49 }
  0xfa   :  { %1730 = vmatpush1.bf16.msra.mxu0 %v1729_v56  ;;  %1799 = vmatpush1.bf16.msra.mxu1 %v1798_v57  ;;  %v386_v56 = vld [vmem:[%s3046_s1 + $0x760] sm:$0xff]  ;;  %v64_v57 = vrot.slane %v2424_v16, %v63_v47  ;;  %v700_v16 = vld [vmem:[%s3046_s1 + $0x7a8] sm:$0xff]  ;;  %v1843_v41 = vpack.c.bf16 %v721_v40, %v719_v39 }
  0xfb   :  { %1732 = vmatprep.subr.bf16.mxu0 %v1731_v59  ;;  %1800 = vmatprep.subr.bf16.mxu1 %v1983_v12  ;;  %v389_v59 = vld [vmem:[%s3046_s1 + $0x780] sm:$0xff]  ;;  %v762_v39 = vld [vmem:[%s3046_s1 + $0xb88] sm:$0xff] }
  0xfc   :  { %v1757_v63 = vpack.c.bf16 %v389_v59, %v386_v56  ;;  %v734_v56 = vld [vmem:[%s3046_s1 + $0x9c8] sm:$0xff]  ;;  %v731_v59 = vld [vmem:[%s3046_s1 + $0x9a0] sm:$0xff] }
  0xfd   :  { %v753_v30 = vld [vmem:[%s3046_s1 + $0xb00] sm:$0xff] }
  0xfe   :  { %1734 = vmatpush1.bf16.msra.mxu0 %v1733_v1  ;;  %1802 = vmatpush1.bf16.msra.mxu1 %v1801_v2  ;;  %v228_v1 = vadd.f32 %v2471_v43, %v64_v57  ;;  %v1821_v2 = vpack.c.bf16 %v702_v62, %v700_v16  ;;  %v706_v43 = vld [vmem:[%s3046_s1 + $0x808] sm:$0xff]  ;;  %v1855_v62 = vpack.c.bf16 %v733_v60, %v731_v59  ;;  %v931_v49 = vld [vmem:[%s3046_s1 + $0xc20] sm:$0xff] }
  0xff   :  { %1736 = vmatprep.subr.bf16.mxu0 %v1735_v5  ;;  %1803 = vmatprep.subr.bf16.mxu1 %v1983_v12  ;;  %v701_v5 = vld [vmem:[%s3046_s1 + $0x7c0] sm:$0xff]  ;;  %v1825_v9 = vpack.c.bf16 %v706_v43, %v704_v6  ;;  %v738_v16 = vld [vmem:[%s3046_s1 + $0xa08] sm:$0xff] }
 0x100   :  { %v1823_v7 = vpack.c.bf16 %v701_v5, %v699_v4  ;;  %v234_v8 = vmax.f32 %v228_v1, 0.0  ;;  %v737_v1 = vld [vmem:[%s3046_s1 + $0xa00] sm:$0xff]  ;;  %v742_v4 = vld [vmem:[%s3046_s1 + $0xa48] sm:$0xff] }
 0x101   :  { %v739_v43 = vld [vmem:[%s3046_s1 + $0xa20] sm:$0xff] }
 0x102   :  { %1738 = vmatpush1.bf16.msra.mxu0 %v1737_v11  ;;  %1805 = vmatpush1.bf16.msra.mxu1 %v1804_v13  ;;  %v705_v11 = vld [vmem:[%s3046_s1 + $0x800] sm:$0xff]  ;;  %v708_v13 = vld [vmem:[%s3046_s1 + $0x828] sm:$0xff] }
 0x103   :  { %1740 = vmatprep.subr.bf16.mxu0 %v1739_v19  ;;  %1806 = vmatprep.subr.bf16.mxu1 %v1983_v12  ;;  %v1827_v19 = vpack.c.bf16 %v705_v11, %v703_v10  ;;  %v1829_v20 = vpack.c.bf16 %v710_v18, %v708_v13  ;;  %v743_v13 = vld [vmem:[%s3046_s1 + $0xa60] sm:$0xff] }
 0x104   :  { %v745_v18 = vld [vmem:[%s3046_s1 + $0xa80] sm:$0xff] }
 0x105   :  { %v932_v50 = vld [vmem:[%s3046_s1 + $0xc40] sm:$0xff] }
 0x106   :  { %1742 = vmatpush1.bf16.msra.mxu0 %v1741_v25  ;;  %1808 = vmatpush1.bf16.msra.mxu1 %v1807_v26  ;;  %v1831_v25 = vpack.c.bf16 %v709_v22, %v707_v21  ;;  %v1833_v26 = vpack.c.bf16 %v714_v24, %v712_v23  ;;  %v1867_v21 = vpack.c.bf16 %v745_v18, %v743_v13  ;;  %v747_v23 = vld [vmem:[%s3046_s1 + $0xaa0] sm:$0xff] }
 0x107   :  { %1744 = vmatprep.subr.bf16.mxu0 %v1743_v28  ;;  %1809 = vmatprep.subr.bf16.mxu1 %v1983_v12  ;;  %v713_v28 = vld [vmem:[%s3046_s1 + $0x880] sm:$0xff] }
 0x108   :  { %v1835_v31 = vpack.c.bf16 %v713_v28, %v711_v27  ;;  %v749_v24 = vld [vmem:[%s3046_s1 + $0xac0] sm:$0xff] }
 0x109   :  { %v1871_v27 = vpack.c.bf16 %v749_v24, %v747_v23  ;;  %v938_v59 = vld [vmem:[%s3046_s1 + $0xd00] sm:$0xff] }
 0x10a   :  { %1746 = vmatpush1.bf16.msra.mxu0 %v1745_v34  ;;  %1811 = vmatpush1.bf16.msra.mxu1 %v1810_v35  ;;  %v717_v34 = vld [vmem:[%s3046_s1 + $0x8c0] sm:$0xff] }
 0x10b   :  { %1748 = vmatprep.subr.bf16.mxu0 %v1747_v37  ;;  %1812 = vmatprep.subr.bf16.mxu1 %v1983_v12  ;;  %v1839_v35 = vpack.c.bf16 %v717_v34, %v715_v33  ;;  %v722_v37 = vld [vmem:[%s3046_s1 + $0x908] sm:$0xff]  ;;  %v1875_v33 = vpack.c.bf16 %v753_v30, %v751_v29 }
 0x10c   :  { %v1841_v38 = vpack.c.bf16 %v722_v37, %v720_v36  ;;  %v757_v36 = vld [vmem:[%s3046_s1 + $0xb40] sm:$0xff]  ;;  %v770_v29 = vld [vmem:[%s3046_s1 + $0xc08] sm:$0xff] }
 0x10e   :  { %1750 = vmatpush1.bf16.msra.mxu0 %v1749_v44  ;;  %1814 = vmatpush1.bf16.msra.mxu1 %v1813_v45  ;;  %v726_v44 = vld [vmem:[%s3046_s1 + $0x948] sm:$0xff]  ;;  %v723_v45 = vld [vmem:[%s3046_s1 + $0x920] sm:$0xff] }
 0x10f   :  { %1752 = vmatprep.subr.bf16.mxu0 %v1751_v48  ;;  %1815 = vmatprep.subr.bf16.mxu1 %v1983_v12  ;;  %v1845_v46 = vpack.c.bf16 %v726_v44, %v724_v42  ;;  %v725_v48 = vld [vmem:[%s3046_s1 + $0x940] sm:$0xff] }
 0x110   :  { %v1847_v51 = vpack.c.bf16 %v725_v48, %v723_v45  ;;  %v761_v42 = vld [vmem:[%s3046_s1 + $0xb80] sm:$0xff]  ;;  %v764_v45 = vld [vmem:[%s3046_s1 + $0xba8] sm:$0xff] }
 0x112   :  { %1754 = vmatpush1.bf16.msra.mxu0 %v1753_v54  ;;  %1817 = vmatpush1.bf16.msra.mxu1 %v1816_v55  ;;  %v729_v54 = vld [vmem:[%s3046_s1 + $0x980] sm:$0xff]  ;;  %v732_v55 = vld [vmem:[%s3046_s1 + $0x9a8] sm:$0xff] }
 0x113   :  { %1756 = vmatprep.subr.bf16.mxu0 %v1755_v58  ;;  %1818 = vmatprep.subr.bf16.mxu1 %v1983_v12  ;;  %v1851_v57 = vpack.c.bf16 %v729_v54, %v727_v53  ;;  %v1853_v58 = vpack.c.bf16 %v734_v56, %v732_v55  ;;  %v934_v53 = vld [vmem:[%s3046_s1 + $0xc80] sm:$0xff] }
 0x114   :  { %v935_v55 = vld [vmem:[%s3046_s1 + $0xca0] sm:$0xff] }
 0x115   :  { %v936_v56 = vld [vmem:[%s3046_s1 + $0xcc0] sm:$0xff] }
 0x116   :  { %1758 = vmatpush1.bf16.msra.mxu0 %v1757_v63  ;;  %1820 = vmatpush1.bf16.msra.mxu1 %v1819_v0  ;;  %v1857_v63 = vpack.c.bf16 %v738_v16, %v736_v61  ;;  %v735_v0 = vld [vmem:[%s3046_s1 + $0x9e0] sm:$0xff] }
 0x117   :  { %1822 = vmatprep.subr.bf16.mxu1 %v1821_v2  ;;  %1893 = vmatprep.subr.bf16.mxu0 %v1983_v12  ;;  %v740_v2 = vld [vmem:[%s3046_s1 + $0xa28] sm:$0xff]  ;;  %v1859_v5 = vpack.c.bf16 %v737_v1, %v735_v0  ;;  %v939_v61 = vld [vmem:[%s3046_s1 + $0xd20] sm:$0xff] }
 0x118   :  { %v1861_v6 = vpack.c.bf16 %v742_v4, %v740_v2  ;;  %v940_v16 = vld [vmem:[%s3046_s1 + $0xd40] sm:$0xff] }
 0x119   :  { %550 = vmatmul.mubr.f32.vlgmr.msra.gmra.mrb[2].mxu0 %v234_v8  ;;  %691 = vmatmul.mubr.f32.vlgmr.msra.gmra.mrb[4].mxu1 %v234_v8  ;;  %v744_v8 = vld [vmem:[%s3046_s1 + $0xa68] sm:$0xff]  ;;  %v942_v0 = vld [vmem:[%s3046_s1 + $0xd80] sm:$0xff] }
 0x11a   :  { %1824 = vmatpush1.bf16.msra.mxu1 %v1823_v7  ;;  %v741_v7 = vld [vmem:[%s3046_s1 + $0xa40] sm:$0xff] }
 0x11b   :  { %1826 = vmatprep.subr.bf16.mxu1 %v1825_v9  ;;  %v746_v9 = vld [vmem:[%s3046_s1 + $0xa88] sm:$0xff]  ;;  %v1863_v10 = vpack.c.bf16 %v741_v7, %v739_v43  ;;  %v943_v2 = vld [vmem:[%s3046_s1 + $0xda0] sm:$0xff] }
 0x11c   :  { %v1865_v11 = vpack.c.bf16 %v746_v9, %v744_v8  ;;  %v944_v4 = vld [vmem:[%s3046_s1 + $0xdc0] sm:$0xff] }
 0x11d   :  { %v946_v43 = vld [vmem:[%s3046_s1 + $0xe00] sm:$0xff] }
 0x11e   :  { %1828 = vmatpush1.bf16.msra.mxu1 %v1827_v19  ;;  %v748_v19 = vld [vmem:[%s3046_s1 + $0xaa8] sm:$0xff] }
 0x11f   :  { %1830 = vmatprep.subr.bf16.mxu1 %v1829_v20  ;;  %v750_v20 = vld [vmem:[%s3046_s1 + $0xac8] sm:$0xff] }
 0x120   :  { %v1869_v22 = vpack.c.bf16 %v750_v20, %v748_v19 }
 0x122   :  { %1832 = vmatpush1.bf16.msra.mxu1 %v1831_v25  ;;  %v752_v25 = vld [vmem:[%s3046_s1 + $0xae8] sm:$0xff] }
 0x123   :  { %1834 = vmatprep.subr.bf16.mxu1 %v1833_v26  ;;  %v754_v26 = vld [vmem:[%s3046_s1 + $0xb08] sm:$0xff] }
 0x124   :  { %v1873_v28 = vpack.c.bf16 %v754_v26, %v752_v25 }
 0x126   :  { %1836 = vmatpush1.bf16.msra.mxu1 %v1835_v31  ;;  %v756_v31 = vld [vmem:[%s3046_s1 + $0xb28] sm:$0xff] }
 0x127   :  { %1838 = vmatprep.subr.bf16.mxu1 %v1837_v32  ;;  %v758_v32 = vld [vmem:[%s3046_s1 + $0xb48] sm:$0xff] }
 0x128   :  { %v1877_v34 = vpack.c.bf16 %v758_v32, %v756_v31 }
 0x12a   :  { %1840 = vmatpush1.bf16.msra.mxu1 %v1839_v35  ;;  %v755_v35 = vld [vmem:[%s3046_s1 + $0xb20] sm:$0xff] }
 0x12b   :  { %1842 = vmatprep.subr.bf16.mxu1 %v1841_v38  ;;  %v1879_v37 = vpack.c.bf16 %v757_v36, %v755_v35  ;;  %v760_v38 = vld [vmem:[%s3046_s1 + $0xb68] sm:$0xff]  ;;  %v769_v35 = vld [vmem:[%s3046_s1 + $0xc00] sm:$0xff] }
 0x12c   :  { %v1881_v40 = vpack.c.bf16 %v762_v39, %v760_v38  ;;  %v947_v38 = vld [vmem:[%s3046_s1 + $0xe20] sm:$0xff] }
 0x12d   :  { %v948_v39 = vld [vmem:[%s3046_s1 + $0xe40] sm:$0xff] }
 0x12e   :  { %1844 = vmatpush1.bf16.msra.mxu1 %v1843_v41  ;;  %v759_v41 = vld [vmem:[%s3046_s1 + $0xb60] sm:$0xff] }
 0x12f   :  { %1846 = vmatprep.subr.bf16.mxu1 %v1845_v46  ;;  %v1883_v44 = vpack.c.bf16 %v761_v42, %v759_v41  ;;  %v766_v46 = vld [vmem:[%s3046_s1 + $0xbc8] sm:$0xff]  ;;  %v949_v41 = vld [vmem:[%s3046_s1 + $0xe60] sm:$0xff] }
 0x130   :  { %v1885_v48 = vpack.c.bf16 %v766_v46, %v764_v45  ;;  %v950_v42 = vld [vmem:[%s3046_s1 + $0xe80] sm:$0xff] }
 0x131   :  { %v1026_v45 = vld [vmem:[%s3046_s1 + $0xea0] sm:$0xff] }
 0x132   :  { %1848 = vmatpush1.bf16.msra.mxu1 %v1847_v51  ;;  %v933_v51 = vld [vmem:[%s3046_s1 + $0xc60] sm:$0xff] }
 0x133   :  { %1850 = vmatprep.subr.bf16.mxu1 %v1849_v52  ;;  %v1894_v52 = vpack.c.bf16 %v932_v50, %v931_v49  ;;  %v1897_v54 = vpack.c.bf16 %v934_v53, %v933_v51  ;;  %v1027_v46 = vld [vmem:[%s3046_s1 + $0xec0] sm:$0xff] }
 0x134   :  { %v1498_v49 = vld [vmem:[%s3046_s1 + $0x1122] ss:$8 sm:$0x3] }
 0x135   :  { %1895 = vmatpush1.bf16.msra.mxu0 %v1894_v52  ;;  %v777_v50 = vrot.slane %v1498_v49, %v2419_v15  ;;  %v781_v51 = vrot.slane %v1498_v49, %v2427_v17 }
 0x136   :  { %1852 = vmatpush1.bf16.msra.mxu1 %v1851_v57  ;;  %1896 = vmatprep.subr.bf16.mxu0 %v1983_v12  ;;  %v1900_v57 = vpack.c.bf16 %v936_v56, %v935_v55  ;;  %v1030_v55 = vld [vmem:[%s3046_s1 + $0xf20] sm:$0xff] }
 0x137   :  { %1854 = vmatprep.subr.bf16.mxu1 %v1853_v58  ;;  %v937_v58 = vld [vmem:[%s3046_s1 + $0xce0] sm:$0xff] }
 0x138   :  { %v1903_v60 = vpack.c.bf16 %v938_v59, %v937_v58  ;;  %v1031_v56 = vld [vmem:[%s3046_s1 + $0xf40] sm:$0xff] }
 0x139   :  { %1898 = vmatpush1.bf16.msra.mxu0 %v1897_v54  ;;  %v1924_v59 = vpack.c.bf16 %v1031_v56, %v1030_v55 }
 0x13a   :  { %1856 = vmatpush1.bf16.msra.mxu1 %v1855_v62  ;;  %1899 = vmatprep.subr.bf16.mxu0 %v1983_v12  ;;  %v1906_v62 = vpack.c.bf16 %v940_v16, %v939_v61  ;;  %v1028_v16 = vld [vmem:[%s3046_s1 + $0xee0] sm:$0xff] }
 0x13b   :  { %1858 = vmatprep.subr.bf16.mxu1 %v1857_v63  ;;  %v941_v63 = vld [vmem:[%s3046_s1 + $0xd60] sm:$0xff] }
 0x13c   :  { %v1909_v1 = vpack.c.bf16 %v942_v0, %v941_v63  ;;  %v12_v0 = vld [vmem:[%s3047_s0 + $0x8] sm:$0x3] }
 0x13d   :  { %1901 = vmatpush1.bf16.msra.mxu0 %v1900_v57 }
 0x13e   :  { %1860 = vmatpush1.bf16.msra.mxu1 %v1859_v5  ;;  %1902 = vmatprep.subr.bf16.mxu0 %v1983_v12  ;;  %v1912_v5 = vpack.c.bf16 %v944_v4, %v943_v2 }
 0x13f   :  { %1862 = vmatprep.subr.bf16.mxu1 %v1861_v6  ;;  %v945_v6 = vld [vmem:[%s3046_s1 + $0xde0] sm:$0xff] }
 0x140   :  { %v1915_v7 = vpack.c.bf16 %v946_v43, %v945_v6 }
 0x141   :  { %1904 = vmatpush1.bf16.msra.mxu0 %v1903_v60 }
 0x142   :  { %1864 = vmatpush1.bf16.msra.mxu1 %v1863_v10  ;;  %1905 = vmatprep.subr.bf16.mxu0 %v1983_v12 }
 0x143   :  { %1866 = vmatprep.subr.bf16.mxu1 %v1865_v11  ;;  %v1495_v11 = vld [vmem:[%s3046_s1 + $0x1121] ss:$8 sm:$0x7] }
 0x144   :  { %v406_v13 = vrot.slane %v1495_v11, %v63_v47  ;;  %v398_v18 = vrot.slane %v1495_v11, %v2419_v15  ;;  %v402_v19 = vrot.slane %v1495_v11, %v2427_v17  ;;  %v1032_v15 = vld [vmem:[%s3046_s1 + $0xf60] sm:$0xff] }
 0x145   :  { %1907 = vmatpush1.bf16.msra.mxu0 %v1906_v62  ;;  %v1033_v17 = vld [vmem:[%s3046_s1 + $0xf80] sm:$0xff] }
 0x146   :  { %1868 = vmatpush1.bf16.msra.mxu1 %v1867_v21  ;;  %1908 = vmatprep.subr.bf16.mxu0 %v1983_v12  ;;  %v1927_v61 = vpack.c.bf16 %v1033_v17, %v1032_v15  ;;  %v1029_v62 = vld [vmem:[%s3046_s1 + $0xf00] sm:$0xff] }
 0x147   :  { %1870 = vmatprep.subr.bf16.mxu1 %v1869_v22  ;;  %v1933_v63 = vpack.c.bf16 %v1029_v62, %v1028_v16  ;;  %v1389_v17 = vld [vmem:[%s3046_s1 + $0x10a0] sm:$0xff] }
 0x148   :  { %v1391_v16 = vld [vmem:[%s3046_s1 + $0x10e0] sm:$0xff] }
 0x149   :  { %1910 = vmatpush1.bf16.msra.mxu0 %v1909_v1  ;;  %v951_v1 = vld [vmem:[%s3046_s1 + $0x1123] ss:$0 sm:$0xff] }
 0x14a   :  { %1872 = vmatpush1.bf16.msra.mxu1 %v1871_v27  ;;  %1911 = vmatprep.subr.bf16.mxu0 %v1983_v12  ;;  %v763_v27 = vld [vmem:[%s3046_s1 + $0xba0] sm:$0xff] }
 0x14b   :  { %1874 = vmatprep.subr.bf16.mxu1 %v1873_v28  ;;  %v768_v28 = vld [vmem:[%s3046_s1 + $0xbe8] sm:$0xff]  ;;  %v1887_v31 = vpack.c.bf16 %v765_v14, %v763_v27 }
 0x14d   :  { %1913 = vmatpush1.bf16.msra.mxu0 %v1912_v5 }
 0x14e   :  { %1876 = vmatpush1.bf16.msra.mxu1 %v1875_v33  ;;  %1914 = vmatprep.subr.bf16.mxu0 %v1983_v12  ;;  %v1889_v33 = vpack.c.bf16 %v770_v29, %v768_v28  ;;  %v1214_v28 = vld [vmem:[%s3046_s1 + $0x1020] sm:$0xff] }
 0x14f   :  { %1878 = vmatprep.subr.bf16.mxu1 %v1877_v34  ;;  %v767_v34 = vld [vmem:[%s3046_s1 + $0xbe0] sm:$0xff] }
 0x150   :  { %v1891_v36 = vpack.c.bf16 %v769_v35, %v767_v34  ;;  %v1215_v29 = vld [vmem:[%s3046_s1 + $0x1040] sm:$0xff] }
 0x151   :  { %1916 = vmatpush1.bf16.msra.mxu0 %v1915_v7  ;;  %v1217_v34 = vld [vmem:[%s3046_s1 + $0x1080] sm:$0xff] }
 0x152   :  { %1880 = vmatpush1.bf16.msra.mxu1 %v1879_v37  ;;  %1917 = vmatprep.subr.bf16.mxu0 %v1983_v12 }
 0x153   :  { %1882 = vmatprep.subr.bf16.mxu1 %v1881_v40  ;;  %v1918_v40 = vpack.c.bf16 %v948_v39, %v947_v38 }
 0x155   :  { %1919 = vmatpush1.bf16.msra.mxu0 %v1918_v40 }
 0x156   :  { %1884 = vmatpush1.bf16.msra.mxu1 %v1883_v44  ;;  %1920 = vmatprep.subr.bf16.mxu0 %v1983_v12  ;;  %v1921_v44 = vpack.c.bf16 %v950_v42, %v949_v41 }
 0x157   :  { %1886 = vmatprep.subr.bf16.mxu1 %v1885_v48  ;;  %v1930_v48 = vpack.c.bf16 %v1027_v46, %v1026_v45  ;;  %v1218_v46 = vld [vmem:[%s3046_s1 + $0x1125] ss:$0 sm:$0xff] }
 0x159   :  { %1922 = vmatpush1.bf16.msra.mxu0 %v1921_v44 }
 0x15a   :  { %1923 = vmatprep.subr.bf16.mxu0 %v1983_v12 }
 0x1c4   :  { %v1540_v8 = vpop.f32.mrb[2].mxu1 }
 0x1c5   :  { %v1541_v9 = vpop.f32.mrb[3].mxu1 }
 0x1c6   :  { %v1542_v10 = vadd.f32 %v1541_v9, %v1540_v8  ;;  %v1034_v8 = vld [vmem:[%s3046_s1 + $0x1124] ss:$0 sm:$0xff] }
 0x1c8   :  { %v623_v20 = vadd.f32 %v1542_v10, %v406_v13 }
 0x1ec   :  { %v551_v21 = vpop.f32.mrb[2].mxu0  ;;  %v692_v22 = vpop.f32.mrb[4].mxu1 }
 0x1ed   :  { %v1953_v23 = vadd.f32 %v551_v21, %v398_v18  ;;  %v693_v24 = vadd.f32 %v692_v22, %v623_v20  ;;  %v553_v25 = vpop.f32.mrb[3].mxu0  ;;  %v694_v26 = vpop.f32.mrb[5].mxu1 }
 0x1ee   :  { %v1954_v47 = vadd.f32 %v553_v25, %v402_v19  ;;  %v13_v19 = vld [vmem:[%s3047_s0 + $0x10] sm:$0x3] }
 0x1ef   :  { %v696_v32 = vmax.f32 %v1953_v23, 0.0  ;;  %v698_v37 = vmax.f32 %v693_v24, 0.0 }
 0x1f0   :  { %v697_v30 = vmax.f32 %v1954_v47, 0.0 }
 0x1f2   :  { %851 = vmatprep.mubr.f32.mxu1 %v697_v30  ;;  %v1210_v30 = vld [vmem:[%s3046_s1 + $0xfa0] sm:$0xff] }
 0x1f3   :  { %852 = vmatmul.mubr.f32.vlgmr.msra.gmra.mrb[6].mxu1 %v696_v32  ;;  %v1211_v32 = vld [vmem:[%s3046_s1 + $0xfc0] sm:$0xff] }
 0x1f4   :  { %1888 = vmatpush1.bf16.msra.mxu1 %v1887_v31  ;;  %922 = vmatprep.mubr.f32.mxu1 %v1982_v3  ;;  %v1936_v31 = vpack.c.bf16 %v1215_v29, %v1214_v28  ;;  %v1942_v35 = vpack.c.bf16 %v1211_v32, %v1210_v30 }
 0x1f5   :  { %1890 = vmatprep.subr.bf16.mxu1 %v1889_v33  ;;  %v1216_v33 = vld [vmem:[%s3046_s1 + $0x1060] sm:$0xff] }
 0x1f6   :  { %v1939_v38 = vpack.c.bf16 %v1217_v34, %v1216_v33 }
 0x1f8   :  { %1892 = vmatpush1.bf16.msra.mxu1 %v1891_v36  ;;  %v1212_v36 = vld [vmem:[%s3046_s1 + $0xfe0] sm:$0xff] }
 0x1f9   :  { %1929 = vmatprep.subr.bf16.mxu1 %v1983_v12 }
 0x1fb   :  { %1499 = vmatmul.mubr.msk.f32.vlgmr.msra.gmra.mrb[6].mxu1 %vm410_vm2, %v698_v37  ;;  %v1213_v37 = vld [vmem:[%s3046_s1 + $0x1000] sm:$0xff] }
 0x1fc   :  { %1931 = vmatpush3.bf16.msra.mxu1 %v1930_v48  ;;  %1587 = vmatprep.mubr.msk.f32.mxu1 %vm1984_vm3, %v1982_v3  ;;  %v1945_v39 = vpack.c.bf16 %v1213_v37, %v1212_v36 }
 0x1fd   :  { %1932 = vmatprep.subr.bf16.mxu1 %v1983_v12 }
 0x200   :  { %1934 = vmatpush3.bf16.msra.mxu1 %v1933_v63  ;;  %v1392_v63 = vld [vmem:[%s3046_s1 + $0x1100] sm:$0xff] }
 0x201   :  { %1941 = vmatprep.subr.bf16.mxu1 %v1983_v12 }
 0x2ce   :  { %v924_v52 = vpop.f32.mrb[6].mxu1 }
 0x2cf   :  { %v1955_v53 = vadd.f32 %v924_v52, %v777_v50  ;;  %v926_v54 = vpop.f32.mrb[7].mxu1 }
 0x2d0   :  { %v1956_v57 = vadd.f32 %v926_v54, %v781_v51 }
 0x2d1   :  { %v929_v60 = vmax.f32 %v1955_v53, 0.0 }
 0x2d2   :  { %v930_v58 = vmax.f32 %v1956_v57, 0.0 }
 0x2d4   :  { %1500 = vmatprep.mubr.msk.f32.mxu0 %vm410_vm2, %v930_v58 }
 0x2d5   :  { %1020 = vmatmul.mubr.f32.vlgmr.msra.gmra.mrb[4].mxu0 %v929_v60 }
 0x2d6   :  { %1925 = vmatpush3.bf16.msra.mxu0 %v1924_v59  ;;  %1576 = vmatprep.mubr.msk.f32.mxu0 %vm1984_vm3, %v1982_v3 }
 0x2d7   :  { %1926 = vmatprep.subr.bf16.mxu0 %v1983_v12 }
 0x2da   :  { %1928 = vmatpush3.bf16.msra.mxu0 %v1927_v61  ;;  %v1390_v61 = vld [vmem:[%s3046_s1 + $0x10c0] sm:$0xff] }
 0x2db   :  { %1935 = vmatprep.subr.bf16.mxu0 %v1983_v12  ;;  %v1948_v62 = vpack.c.bf16 %v1390_v61, %v1389_v17 }
 0x2dd   :  { %1577 = vmatmul.mubr.msk.f32.vlgmr.msra.gmra.mrb[6].mxu0 %vm410_vm2, %v12_v0  ;;  %v1951_v0 = vpack.c.bf16 %v1392_v63, %v1391_v16 }
 0x2de   :  { %1598 = vmatprep.mubr.msk.f32.mxu0 %vm1984_vm3, %v1982_v3  ;;  %1937 = vmatpush3.bf16.msra.mxu0 %v1936_v31 }
 0x2df   :  { %1938 = vmatprep.subr.bf16.mxu0 %v1983_v12 }
 0x2e2   :  { %1940 = vmatpush3.bf16.msra.mxu0 %v1939_v38 }
 0x2e3   :  { %1947 = vmatprep.subr.bf16.mxu0 %v1983_v12 }
 0x3a8   :  { %v1021_v2 = vpop.f32.mrb[4].mxu0 }
 0x3a9   :  { %v1022_v4 = vadd.f32 %v1021_v2, %v951_v1  ;;  %v1023_v5 = vpop.f32.mrb[5].mxu0 }
 0x3ab   :  { %v1025_v6 = vmax.f32 %v1022_v4, 0.0 }
 0x3ad   :  { %1588 = vmatmul.mubr.msk.f32.vlgmr.msra.gmra.mrb[8].mxu1 %vm410_vm2, %v1025_v6  ;;  %v1393_v6 = vld [vmem:[%s3046_s1 + $0x1126] ss:$0 sm:$0xff] }
 0x3ae   :  { %1609 = vmatprep.mubr.msk.f32.mxu1 %vm1984_vm3, %v1982_v3  ;;  %1943 = vmatpush3.bf16.msra.mxu1 %v1942_v35 }
 0x3af   :  { %1944 = vmatprep.subr.bf16.mxu1 %v1983_v12 }
 0x3b0   :  { %v1104_v43 = vpop.f32.mrb[6].mxu0 }
 0x3b1   :  { %v1578_v7 = vpop.f32.mrb[7].mxu0 }
 0x3b2   :  { %1946 = vmatpush3.bf16.msra.mxu1 %v1945_v39 }
 0x480   :  { %v1177_v9 = vpop.f32.mrb[8].mxu1 }
 0x481   :  { %v1178_v10 = vadd.f32 %v1177_v9, %v1104_v43  ;;  %v1589_v11 = vpop.f32.mrb[9].mxu1 }
 0x483   :  { %v1181_v13 = vadd.f32 %v1178_v10, %v1034_v8 }
 0x485   :  { %1966 = vtanh.f32 %v1181_v13  ;;  %v1503_v20 = vmul.f32 -1.442695, %v1181_v13 }
 0x487   :  { %1968 = vpow2.f32 %v1503_v20 }
 0x48f   :  { %v1967_v18 = vpop.eup %1966 }
 0x490   :  { %1195 = vrot.lane.b32.xlu0 %v1967_v18, %s1985_s19 }
 0x491   :  { %v1969_v21 = vpop.eup %1968 }
 0x492   :  { %v1185_v22 = vadd.f32 1.0, %v1969_v21 }
 0x494   :  { %1190 = vrot.lane.b32.xlu0 %v13_v19, %s1986_s22  ;;  %1970 = vrcp.f32 %v1185_v22 }
 0x49e   :  { %v1971_v23 = vpop.eup %1970 }
 0x502   :  { %v1196_v24 = vpop.permute.xlu0 %1195 }
 0x503   :  { %v1198_v25 = vmul.f32 %v1971_v23, %v1196_v24 }
 0x505   :  { %1200 = vrot.lane.b32.xlu1 %v1198_v25, %s1986_s22 }
 0x506   :  { %v1191_v26 = vpop.permute.xlu0 %1190 }
 0x507   :  { %v1193_v27 = vmul.f32 %v1971_v23, %v1191_v26 }
 0x577   :  { %v1201_v14 = vpop.permute.xlu1 %1200 }
 0x578   :  { %v1203_v47 = vadd.f32 %v1201_v14, %v1193_v27 }
 0x57a   :  { %1972 = vtanh.f32 %v1203_v47 }
 0x584   :  { %v1973_v40 = vpop.eup %1972 }
 0x585   :  { %1206 = vrot.lane.b32.xlu1 %v1973_v40, %s1985_s19 }
 0x5f7   :  { %v1207_v41 = vpop.permute.xlu1 %1206 }
 0x5f8   :  { %v1209_v42 = vmul.f32 %v1971_v23, %v1207_v41 }
 0x5fa   :  { %1220 = vrot.lane.b32.xlu0 %v1209_v42, %s1986_s22 }
 0x66c   :  { %v1221_v44 = vpop.permute.xlu0 %1220 }
 0x66d   :  { %1599 = vmatmul.mubr.msk.f32.vlgmr.msra.gmra.mrb[8].mxu0 %vm410_vm2, %v1221_v44  ;;  %1610 = vmatmul.mubr.msk.f32.vlgmr.msra.gmra.mrb[10].mxu1 %vm410_vm2, %v1221_v44 }
 0x66e   :  { %1620 = vmatprep.mubr.msk.f32.mxu0 %vm1984_vm3, %v1982_v3  ;;  %1949 = vmatpush3.bf16.msra.mxu0 %v1948_v62 }
 0x66f   :  { %1950 = vmatprep.subr.bf16.mxu0 %v1983_v12 }
 0x672   :  { %1952 = vmatpush3.bf16.msra.mxu0 %v1951_v0 }
 0x740   :  { %v1290_v45 = vpop.f32.mrb[8].mxu0  ;;  %v1360_v48 = vpop.f32.mrb[10].mxu1 }
 0x741   :  { %v1361_v49 = vadd.f32 %v1360_v48, %v1290_v45  ;;  %v1600_v50 = vpop.f32.mrb[9].mxu0  ;;  %v1611_v51 = vpop.f32.mrb[11].mxu1 }
 0x743   :  { %v1364_v52 = vadd.f32 %v1361_v49, %v1218_v46 }
 0x745   :  { %1974 = vtanh.f32 %v1364_v52  ;;  %v1506_v54 = vmul.f32 -1.442695, %v1364_v52 }
 0x747   :  { %1976 = vpow2.f32 %v1506_v54 }
 0x74f   :  { %v1975_v53 = vpop.eup %1974 }
 0x750   :  { %1374 = vrot.lane.b32.xlu1 %v1975_v53, %s1985_s19 }
 0x751   :  { %v1977_v55 = vpop.eup %1976 }
 0x752   :  { %v1368_v56 = vadd.f32 1.0, %v1977_v55 }
 0x754   :  { %1978 = vrcp.f32 %v1368_v56 }
 0x75e   :  { %v1979_v3 = vpop.eup %1978 }
 0x75f   :  { %v1372_v59 = vmul.f32 %v1979_v3, %v1203_v47 }
 0x7c2   :  { %v1375_v57 = vpop.permute.xlu1 %1374 }
 0x7c3   :  { %v1377_v58 = vmul.f32 %v1979_v3, %v1375_v57 }
 0x7c5   :  { %1379 = vrot.lane.b32.xlu0 %v1377_v58, %s1986_s22 }
 0x837   :  { %v1380_v60 = vpop.permute.xlu0 %1379 }
 0x838   :  { %v1382_v15 = vadd.f32 %v1380_v60, %v1372_v59 }
 0x83a   :  { %1980 = vtanh.f32 %v1382_v15 }
 0x844   :  { %v1981_v1 = vpop.eup %1980 }
 0x845   :  { %1385 = vrot.lane.b32.xlu1 %v1981_v1, %s1985_s19 }
 0x8b7   :  { %v1386_v2 = vpop.permute.xlu1 %1385 }
 0x8b8   :  { %v1388_v4 = vmul.f32 %v1979_v3, %v1386_v2 }
 0x8ba   :  { %1469 = vrot.lane.b32.xlu1 %v1388_v4, %s1985_s19  ;;  %1395 = vrot.lane.b32.xlu0 %v1388_v4, %s1986_s22 }
 0x8be   :  { %1473 = vrot.lane.b32.xlu0 %v1382_v15, %s1986_s22 }
 0x92c   :  { %v1396_v5 = vpop.permute.xlu0 %1395  ;;  %v1470_v8 = vpop.permute.xlu1 %1469 }
 0x92d   :  { %1621 = vmatmul.mubr.msk.f32.vlgmr.msra.gmra.mrb[10].mxu0 %vm410_vm2, %v1396_v5 }
 0x930   :  { %v1474_v10 = vpop.permute.xlu0 %1473 }
 0xa00   :  { %v1465_v12 = vpop.f32.mrb[10].mxu0 }
 0xa01   :  { %v1466_v43 = vadd.f32 %v1465_v12, %v1393_v6  ;;  %v1622_v7 = vpop.f32.mrb[11].mxu0 }
 0xa03   :  { %v1477_v9 = vsel %vm1476_vm4, %v1466_v43, 0.0 }
 0xa04   :  { %v1478_v11 = vsel %vm410_vm2, %v1477_v9, %v1470_v8 }
 0xa05   :  { %v1480_v13 = vsel %vm1479_vm5, %v1478_v11, %v1474_v10 }
 0xa06   :  { %v1482_v18 = vsel %vm1481_vm6, %v1480_v13, 0.0 }
 0xa07   :  { %1483 = vst [vmem:[%s3048_s2] sm:$0x3] %v1482_v18 }

</bundles_post_ra>
